<compile_context>
chip_gen: v7x
topology: tpu7x:2x2x1
jax: 0.10.0
libtpu: 0.0.40
codegen_flags: <defaults>
</compile_context>

<pallas_src>
import jax
import jax.numpy as jnp
from jax import lax
from jax.experimental import pallas as pl
from jax.experimental.pallas import tpu as pltpu

IN_FEATURES = 768
OUT_FEATURES = 4096


def _proj_kernel(x_ref, w_ref, o_ref):
    # x_ref: (tm, K); w_ref: (tn, K) in native PyTorch (out, in) layout.
    # Contract the trailing K of both operands -> (tm, tn); f32 MXU accumulate.
    # This is a transposed-RHS matmul: no in-kernel transpose of the weight
    # tile is materialized.
    o_ref[...] = lax.dot_general(
        x_ref[...], w_ref[...],
        dimension_numbers=(((1,), (1,)), ((), ())),
        preferred_element_type=jnp.float32,
    ).astype(o_ref.dtype)


def linear_matrix_l14(x, weight, *, tn=1024, tm_cap=256):
    """y = x @ weight.T with weight kept in PyTorch (out_features, in_features) layout."""
    orig_shape = x.shape
    K = orig_shape[-1]
    N, Kw = weight.shape
    assert K == Kw == IN_FEATURES and N == OUT_FEATURES

    x2d = x.reshape(-1, K)
    M = x2d.shape[0]

    # Small M: single full-extent M tile (full dims are exempt from the (8,128)
    # divisibility rule).  Large M: cap the tile and pad so a huge batch can't
    # blow VMEM (robustness guard -- the kernel is weight-HBM-bound either way).
    if M <= tm_cap:
        tm, Mp = M, M
    else:
        tm = tm_cap
        Mp = ((M + tm - 1) // tm) * tm
        x2d = jnp.pad(x2d, ((0, Mp - M), (0, 0)))

    tn = min(tn, N)
    assert N % tn == 0

    itemsize = jnp.dtype(x.dtype).itemsize
    cost = pl.CostEstimate(
        flops=2 * Mp * N * K,
        transcendentals=0,
        bytes_accessed=(
            weight.size * jnp.dtype(weight.dtype).itemsize
            + Mp * K * itemsize
            + Mp * N * itemsize
        ),
    )

    out = pl.pallas_call(
        _proj_kernel,
        out_shape=jax.ShapeDtypeStruct((Mp, N), x.dtype),
        grid=(Mp // tm, N // tn),
        in_specs=[
            # Activation tile: resident across the N axis (index map constant in j).
            pl.BlockSpec((tm, K), lambda i, j: (i, 0)),
            # Weight tile in native (N, K) layout -- streamed along N only.
            pl.BlockSpec((tn, K), lambda i, j: (j, 0)),
        ],
        out_specs=pl.BlockSpec((tm, tn), lambda i, j: (i, j)),
        compiler_params=pltpu.CompilerParams(
            dimension_semantics=("parallel", "parallel"),
            vmem_limit_bytes=32 * 1024 * 1024,  # insurance for v5e's 16 MiB default
        ),
        cost_estimate=cost,
    )(x2d, weight)

    if Mp != M:
        out = out[:M]  # drop padded rows before any downstream reduction
    return out.reshape(*orig_shape[:-1], N)


def _l2_normalize(x):
    return x / jnp.linalg.norm(x, axis=-1, keepdims=True)


def expclip_feature_path(image_feats, text_feats, weight, logit_scale_param):
    """ExpCLIP_Test forward minus the CLIP encoders (Dynamic_FER-style image path).

    image_feats: (n, t, 768) per-frame CLIP image features (already .float()).
    text_feats:  (b, 768) CLIP text features (already .float()).
    """
    # TODO(synk): CLIP ViT image/text encoders + tokenizer are external
    # pretrained models and are not translated; their f32 feature outputs are
    # taken as kernel inputs.
    n = image_feats.shape[0]

    # Frame mean BEFORE the (bias-free) linear: mean_t(x) @ W^T == mean_t(x @ W^T).
    img_mean = jnp.mean(image_feats, axis=1)                     # (n, 768)

    # Single fused projection: the 12 MB weight streams from HBM exactly once.
    fused_in = jnp.concatenate([img_mean, text_feats], axis=0)   # (n+b, 768)
    fused_out = linear_matrix_l14(fused_in, weight)              # (n+b, 4096)

    image_features = _l2_normalize(fused_out[:n])
    text_features = _l2_normalize(fused_out[n:])

    logit_scale = jnp.exp(logit_scale_param)
    return logit_scale, image_features, text_features


if __name__ == "__main__":
    key = jax.random.PRNGKey(0)
    kx, kt, kw = jax.random.split(key, 3)

    # Small shapes: n=2 clips x t=8 frames of image features, b=2 text features.
    n, t, b = 2, 8, 2
    image_feats = jax.random.normal(kx, (n, t, IN_FEATURES), dtype=jnp.float32)
    text_feats = jax.random.normal(kt, (b, IN_FEATURES), dtype=jnp.float32)

    # nn.Linear default init: uniform(-1/sqrt(in), 1/sqrt(in)), PyTorch (out, in) layout.
    bound = 1.0 / (IN_FEATURES ** 0.5)
    weight = jax.random.uniform(
        kw, (OUT_FEATURES, IN_FEATURES), dtype=jnp.float32,
        minval=-bound, maxval=bound,
    )
    logit_scale_param = jnp.float32(2.6592)  # CLIP's ln(1/0.07) init

    logit_scale, image_features, text_features = expclip_feature_path(
        image_feats, text_feats, weight, logit_scale_param
    )
    logit_scale, image_features, text_features = jax.block_until_ready(
        (logit_scale, image_features, text_features)
    )

    # Reference (plain JAX) for the original ordering: project per-frame, then mean.
    img_ref = jnp.einsum("ntk,ok->nto", image_feats, weight)
    img_ref = jnp.mean(img_ref, axis=1)
    img_ref = img_ref / jnp.linalg.norm(img_ref, axis=-1, keepdims=True)
    txt_ref = jnp.einsum("bk,ok->bo", text_feats, weight)
    txt_ref = txt_ref / jnp.linalg.norm(txt_ref, axis=-1, keepdims=True)

    assert image_features.shape == (n, OUT_FEATURES)
    assert text_features.shape == (b, OUT_FEATURES)
    assert jnp.allclose(image_features, img_ref, atol=1e-4, rtol=1e-4)
    assert jnp.allclose(text_features, txt_ref, atol=1e-4, rtol=1e-4)
    assert jnp.allclose(logit_scale, jnp.exp(logit_scale_param))

    print("KERNEL_OK")
</pallas_src>

<mosaic_0001>
module attributes {stable_mosaic.version = 11 : i64} {
  func.func @_proj_kernel(%arg0: i32, %arg1: i32, %arg2: memref<4x768xf32, #tpu.memory_space<vmem>>, %arg3: memref<1024x768xf32, #tpu.memory_space<vmem>>, %arg4: memref<4x1024xf32, #tpu.memory_space<vmem>>) attributes {dimension_semantics = [#tpu.dimension_semantics<parallel>, #tpu.dimension_semantics<parallel>], iteration_bounds = array<i64: 1, 4>, scalar_prefetch = 0 : i64, scratch_operands = 0 : i64, tpu.core_type = #tpu.core_type<tc>, window_params = [{transform_indices = @transform_0, window_bounds = array<i64: 4, 768>}, {transform_indices = @transform_1, window_bounds = array<i64: 1024, 768>}, {transform_indices = @transform_2, window_bounds = array<i64: 4, 1024>}]} {
    %c0 = arith.constant 0 : index
    %c0_0 = arith.constant 0 : index
    %0 = vector.load %arg2[%c0, %c0_0] : memref<4x768xf32, #tpu.memory_space<vmem>>, vector<4x768xf32>
    %c0_1 = arith.constant 0 : index
    %c0_2 = arith.constant 0 : index
    %1 = vector.load %arg3[%c0_1, %c0_2] : memref<1024x768xf32, #tpu.memory_space<vmem>>, vector<1024x768xf32>
    %cst = arith.constant dense<0.000000e+00> : vector<4x1024xf32>
    %2 = tpu.matmul %0, %1, %cst {dimension_numbers = #tpu.dot_dimension_numbers<[1], [1], [0], [0], [0, 0, 1, 0], [], []>} : vector<4x768xf32>, vector<1024x768xf32>, vector<4x1024xf32> -> vector<4x1024xf32>
    %c0_3 = arith.constant 0 : index
    %c0_4 = arith.constant 0 : index
    %3 = vector.load %arg4[%c0_3, %c0_4] : memref<4x1024xf32, #tpu.memory_space<vmem>>, vector<4x1024xf32>
    tpu.vector_store %arg4[%c0_3, %c0_4], %2 {strides = array<i32>} : memref<4x1024xf32, #tpu.memory_space<vmem>>, vector<4x1024xf32>,
    return
  }
  func.func @transform_0(%arg0: i32, %arg1: i32) -> (i32, i32) {
    %c0_i32 = arith.constant 0 : i32
    %c0_i32_0 = arith.constant 0 : i32
    return %arg0, %c0_i32 : i32, i32
  }
  func.func @transform_1(%arg0: i32, %arg1: i32) -> (i32, i32) {
    %c0_i32 = arith.constant 0 : i32
    %c0_i32_0 = arith.constant 0 : i32
    return %arg1, %c0_i32 : i32, i32
  }
  func.func @transform_2(%arg0: i32, %arg1: i32) -> (i32, i32) {
    %c0_i32 = arith.constant 0 : i32
    return %arg0, %arg1 : i32, i32
  }
}

</mosaic_0001>

<bundles_post_ra>
// kernel: tpu_custom_call.1
= control target key start
LH: loop header
LB: loop body
LE: loop exit
PB: predicated region body
PF: predicated region fallthrough
CT: control target
= control target key end

     0   :  { %7 = vsyncpa [#allocation3], 0  ;;  %s4046_s0 = inlined_call_operand.hbm [shape: f32[4,768], index: 0, kind: input, shape index: {}]   ;;  %s4047_s1 = inlined_call_operand.hbm [shape: f32[4096,768], index: 1, kind: input, shape index: {}]   ;;  %s4048_s2 = inlined_call_operand.hbm [shape: f32[4,4096], index: 2, kind: output, shape index: {}]  }
   0x1   :  { %8 = vsyncpa [#allocation6], 0 }
   0x2   :  { %10 = vsyncpa [#allocation6 + $0x1], 0 }
   0x3   :  { %11 = vsyncpa [#allocation4], 0 }
   0x4   :  { %13 = vsyncpa [#allocation4 + $0x1], 0  ;;  %s3015_s9 = smov 0   ;;  %s3017_s10 = smov 0  }
   0x5   :  { %s3019_s11 = smov 0   ;;  %s3021_s12 = smov 0  }
   0x6   :  { %s3023_s13 = smov 0   ;;  %s3025_s14 = smov 0  }
   0x7 LB: > { %s1964_s15 = sadd.s32 4294967295, %s2993_s14   ;;  %s1965_s16 = sadd.s32 4294967294, %s2993_s14   ;;  %s2993_s14 = sphi %s3025_s14, %s19_s14   ;;  %s2989_s13 = sphi %s3023_s13, %s4075_s13   ;;  %s2985_s12 = sphi %s3021_s12, %s4074_s12   ;;  %s2981_s11 = sphi %s3019_s11, %s4073_s11   ;;  %s2977_s10 = sphi %s3017_s10, %s4072_s10   ;;  %s2973_s9 = sphi %s3015_s9, %s4071_s9  }
   0x8   : > { %s64_s17 = sadd.s32 1, %s2981_s11  ;;  %p71_p0 = scmp.ne.s32.totalorder %s2981_s11, %s2977_s10 }
   0x9   : > { %p72_p1 = scmp.eq.s32.totalorder %s2993_s14, 0  ;;  %p77_p2 = scmp.ne.s32.totalorder %s2977_s10, %s2973_s9 }
   0xa   : > { %p3053_p3 = scmp.eq.s32.totalorder %s1964_s15, 0  ;;  %p103_p4 = scmp.eq.s32.totalorder %s1964_s15, 3 }
   0xb   : > { %p3057_p5 = por %p72_p1, %p71_p0  ;;  %p109_p6 = scmp.eq.s32.totalorder %s1965_s16, 3 }
   0xc   : > { %s4055_s18 = scalar_select %p3053_p3, 1, 0 }
   0xd   : > { %p3063_p7 = por %p3053_p3, %p77_p2  ;;  %p3067_p8 = por %p103_p4, %p71_p0 }
   0xe   : > { %p3071_p9 = por %p109_p6, %p77_p2  ;;  %p1966_p10 = scmp.ge.s32.totalorder %s2993_s14, 1 }
   0xf   : > { %s4057_s20 = scalar_select %p3063_p7, 1, 0 }
  0x10   : > { %s4058_s21 = scalar_select %p3067_p8, 1, 0 }
  0x11   : > { %s4059_s22 = scalar_select %p3071_p9, 1, 0 }
  0x12   : > { %p116_p11 = scmp.lt.s32.totalorder %s2993_s14, 5  ;;  %s2995_s24 = smov [#allocation2]  }
  0x13   : > { %s132_s25 = sshll.u32 %s2995_s24, 4  ;;  %p2789_p13 = scmp.lt.s32.totalorder %s2993_s14, 4  ;;  %s133_s25 = int_to_ptr.vmem [resolvable:$true] %s132_s25 }
  0x14   : > { %p3077_p12 = pnand %p1966_p10, %p116_p11  ;;  %s28_s28 = sadd.s32 1, %s2989_s13 }
  0x15   : > { %p3086_p1 = pnand %p2789_p13, %p3057_p5  ;;  %p3097_p4 = scmp.ge.s32.totalorder %s28_s28, 4 }
  0x16   : > { %s4060_s23 = scalar_select %p3077_p12, 1, 0 }
  0x17   : > { %p2776_p0 = pneg %p3077_p12  ;;  %s143_s30 = sand.u32 1, %s2981_s11  }
  0x18   : > { %s4061_s26 = scalar_select %p3086_p1, 1, 0 }
  0x19   : > { %p3092_p2 = pnand %p2776_p0, %p3053_p3  ;;  %s2849_s5 = scalar_lea.hbm %s4046_s0, 384 }
  0x1a   : > { %s4063_s29 = scalar_select %p3097_p4, 1, 0 }
  0x1b   : > { %p2850_p5 = scmp.ne.s32.totalorder %s4046_s0, %s2849_s5  ;;  %p2851_p6 = pneg %p3092_p2 }
  0x1c   : > { %p2856_p13 = scmp.lt.u32.totalorder %s2849_s5, %s4046_s0 }
  0x1d   : > { %p2852_p10 = pnand %p2851_p6, %p2850_p5 }
  0x1f   : > { %p2853_p11 = pneg %p2852_p10 }
  0x21   : > { %p2858_p0 = pnand %p2856_p13, %p2853_p11 }
  0x23   : > { %2861 = shalt.err (!%p2858_p0)
}
  0x24   : > { %s2862_s16 = scalar_lea.vmem %s133_s25, 384  ;;  %p2870_p3 = scmp.lt.s32.totalorder %s133_s25, %s133_s25 }
  0x25   : > { %p2863_p9 = scmp.ne.s32.totalorder %s133_s25, %s2862_s16  ;;  %p2871_p12 = scmp.lt.s32.totalorder %s2862_s16, %s2862_s16 }
  0x27   : > { %p2865_p8 = pnand %p2863_p9, %p2851_p6  ;;  %p2872_p1 = por %p2871_p12, %p2870_p3 }
  0x29   : > { %p2866_p7 = pneg %p2865_p8 }
  0x2b   : > { %p2873_p4 = pnand %p2872_p1, %p2866_p7 }
  0x2d   : > { %2876 = shalt.err (!%p2873_p4)
}
  0x2e   : > { %2779 = dma.hbm_to_vmem [thread:$0]  (!%p3092_p2), %s4046_s0, 384, %s133_s25, [#allocation3]  }
  0x2f   : > { %p4064_p9 = scmp.ne.s32.totalorder %s4063_s29, 0  ;;  %s2765_s3 = smul.u32 6144, %s143_s30 }
  0x30   : > { %s2766_s5 = smul.u32 98304, %s2989_s13  ;;  %s3137_s29 = scalar_lea.sflag [#allocation6], %s143_s30 }
  0x31   : > { %s4077_s28 = smov (%p4064_p9, %s28_s28), 0  ;;  %s147_s8 = scalar_lea.vmem [#allocation5], %s2765_s3 }
  0x32   : > { %s61_s4 = ssub.s32 %s2989_s13, %s4077_s28  ;;  %s3128_s7 = scalar_lea.hbm %s4047_s1, %s2766_s5 }
  0x33   : > { %p62_p3 = scmp.eq.s32.totalorder %s61_s4, 0  ;;  %s155_s15 = sshll.u32 %s147_s8, 4  ;;  %s3135_s15 = int_to_ptr.vmem [resolvable:$true] %s155_s15 }
  0x34   : > { %s2877_s16 = scalar_lea.hbm %s3128_s7, 98304  ;;  %p4065_p8 = scmp.ne.s32.totalorder %s4061_s26, 0 }
  0x35   : > { %s3133_s25 = scalar_select %p62_p3, %s2981_s11, %s64_s17  }
  0x36   : > { %p2878_p7 = scmp.ne.s32.totalorder %s3128_s7, %s2877_s16  ;;  %p2879_p12 = pneg %p4065_p8 }
  0x37   : > { %s2882_s3 = scalar_lea.hbm %s4047_s1, 393216  ;;  %p2883_p4 = scmp.lt.u32.totalorder %s3128_s7, %s4047_s1 }
  0x38   : > { %p2880_p1 = pnand %p2879_p12, %p2878_p7  ;;  %p2884_p5 = scmp.lt.u32.totalorder %s2882_s3, %s2877_s16 }
  0x39   : > { %p2886_p10 = scmp.lt.u32.totalorder %s2877_s16, %s3128_s7 }
  0x3a   : > { %p2881_p2 = pneg %p2880_p1  ;;  %p2885_p6 = por %p2884_p5, %p2883_p4 }
  0x3c   : > { %p2887_p11 = por %p2886_p10, %p2885_p6 }
  0x3e   : > { %p2888_p13 = pnand %p2887_p11, %p2881_p2 }
  0x40   : > { %2891 = shalt.err (!%p2888_p13)
}
  0x41   : > { %s2892_s17 = scalar_lea.vmem %s3135_s15, 98304  ;;  %s2996_s30 = smov [#allocation5]  }
  0x42   : > { %p2893_p0 = scmp.ne.s32.totalorder %s3135_s15, %s2892_s17  ;;  %s2897_s27 = sshll.u32 %s2996_s30, 4  ;;  %s2898_s27 = int_to_ptr.vmem [resolvable:$false] %s2897_s27 }
  0x43   : > { %s2899_s6 = scalar_lea.vmem %s2898_s27, 196608  ;;  %p2900_p7 = scmp.lt.s32.totalorder %s3135_s15, %s2898_s27 }
  0x44   : > { %p2895_p9 = pnand %p2893_p0, %p2879_p12  ;;  %p2901_p1 = scmp.lt.s32.totalorder %s2899_s6, %s2892_s17 }
  0x46   : > { %p2896_p3 = pneg %p2895_p9  ;;  %p2902_p4 = por %p2901_p1, %p2900_p7 }
  0x48   : > { %p2903_p5 = pnand %p2902_p4, %p2896_p3 }
  0x4a   : > { %2906 = shalt.err (!%p2903_p5)
}
  0x4b   : > { %s2997_s8 = smov 768   ;;  %s2998_s16 = smov 48  }
  0x4c   : > { %2783 = dma.hbm_to_vmem [thread:$0]  (!%p4065_p8), %s3128_s7, 98304, %s3135_s15, %s3137_s29, %s2997_s8, %s2997_s8, %s2998_s16  }
  0x4d   : > { %p4066_p12 = scmp.ne.s32.totalorder %s4060_s23, 0 }
  0x4e   : > { %p4067_p2 = scmp.ne.s32.totalorder (!%p4066_p12), %s4055_s18, 0 }
  0x4f   : > { %167 = sbr.rel (%p4066_p12) target bundleno = 1094 (0x446), region = 28 }
  0x56   : > { %2960 = dma.done.wait (%p4067_p2), [#allocation3], 384  }
  0x57   : > { %2962 = vsyncadd (%p4067_p2), [#allocation3], 4294966912  ;;  %s3172_s19 = sand.u32 1, %s2977_s10   ;;  %p4068_p8 = scmp.ne.s32.totalorder %s4057_s20, 0 }
  0x58   : > { %s2767_s24 = smul.u32 6144, %s3172_s19  ;;  %s174_s3 = scalar_lea.sflag [#allocation6], %s3172_s19 }
  0x5a   : > { %s3176_s4 = scalar_lea.vmem [#allocation5], %s2767_s24 }
  0x5b   : > { %2964 = dma.done.wait (%p4068_p8), %s174_s3, 98304  }
  0x5c   : > { %2966 = vsyncadd (%p4068_p8), %s174_s3, 4294868992  ;;  %v204_v0 = vld [vmem:[%s3176_s4 + $0x8] sm:$0xff]  ;;  %v210_v1 = vld [vmem:[%s3176_s4 + $0x38] sm:$0xff]  ;;  %s1974_s18 = sshll.u32 %s3172_s19, 5  ;;  %s1980_s23 = sshll.u32 %s2985_s12, 9 }
  0x5d   : > { %v396_v2 = vld [vmem:[%s3176_s4 + $0x608] sm:$0xff]  ;;  %v1981_v3 = vpack.c.bf16 %v210_v1, %v204_v0  ;;  %v402_v4 = vld [vmem:[%s3176_s4 + $0x638] sm:$0xff]  ;;  %v203_v5 = vld [vmem:[%s3176_s4] sm:$0xff]  ;;  %s3829_s20 = scalar_lea.vmem [#allocation7], %s1974_s18  ;;  %s3996_s29 = scalar_lea.hbm %s4048_s2, %s1980_s23 }
  0x5e   : > { %v209_v6 = vld [vmem:[%s3176_s4 + $0x30] sm:$0xff]  ;;  %v2173_v7 = vpack.c.bf16 %v402_v4, %v396_v2  ;;  %v395_v9 = vld [vmem:[%s3176_s4 + $0x600] sm:$0xff]  ;;  %v216_v11 = vld [vmem:[%s3176_s4 + $0x68] sm:$0xff]  ;;  %s1869_s26 = sshll.u32 %s3829_s20, 4  ;;  %s1853_s5 = scalar_lea.sflag [#allocation4], %s3172_s19  ;;  %s3998_s26 = int_to_ptr.vmem [resolvable:$true] %s1869_s26 }
  0x5f   : > { %v1983_v8 = vpack.c.bf16 %v209_v6, %v203_v5  ;;  %v401_v10 = vld [vmem:[%s3176_s4 + $0x630] sm:$0xff]  ;;  %1982 = vmatprep.subr.bf16.mxu0 %v1981_v3  ;;  %v222_v13 = vld [vmem:[%s3176_s4 + $0x98] sm:$0xff]  ;;  %v408_v14 = vld [vmem:[%s3176_s4 + $0x668] sm:$0xff]  ;;  %s2907_s12 = scalar_lea.vmem %s3998_s26, 512  ;;  %p4069_p10 = scmp.ne.s32.totalorder %s4058_s21, 0 }
  0x60   : > { %v2175_v12 = vpack.c.bf16 %v401_v10, %v395_v9  ;;  %v414_v15 = vld [vmem:[%s3176_s4 + $0x698] sm:$0xff]  ;;  %2174 = vmatprep.subr.bf16.mxu1 %v2173_v7  ;;  %v1985_v16 = vpack.c.bf16 %v222_v13, %v216_v11  ;;  %v215_v18 = vld [vmem:[%s3176_s4 + $0x60] sm:$0xff]  ;;  %v221_v19 = vld [vmem:[%s3176_s4 + $0x90] sm:$0xff]  ;;  %p2908_p6 = scmp.ne.s32.totalorder %s3998_s26, %s2907_s12  ;;  %s2999_s17 = smov [#allocation7]  }
  0x61   : > { %1984 = vmatpush1.bf16.xpose.msra.mxu0 %v1983_v8  ;;  %v2177_v17 = vpack.c.bf16 %v414_v15, %v408_v14  ;;  %v407_v20 = vld [vmem:[%s3176_s4 + $0x660] sm:$0xff]  ;;  %v413_v21 = vld [vmem:[%s3176_s4 + $0x690] sm:$0xff]  ;;  %v228_v22 = vld [vmem:[%s3176_s4 + $0xc8] sm:$0xff]  ;;  %v1987_v26 = vpack.c.bf16 %v221_v19, %v215_v18  ;;  %s2911_s30 = sshll.u32 %s2999_s17, 4  ;;  %s2912_s30 = int_to_ptr.vmem [resolvable:$false] %s2911_s30 }
  0x62   : > { %2176 = vmatpush1.bf16.xpose.msra.mxu1 %v2175_v12  ;;  %1986 = vmatprep.subr.bf16.mxu0 %v1985_v16  ;;  %v234_v23 = vld [vmem:[%s3176_s4 + $0xf8] sm:$0xff]  ;;  %v420_v24 = vld [vmem:[%s3176_s4 + $0x6c8] sm:$0xff]  ;;  %v2179_v27 = vpack.c.bf16 %v413_v21, %v407_v20  ;;  %v227_v30 = vld [vmem:[%s3176_s4 + $0xc0] sm:$0xff]  ;;  %p2909_p11 = pnand %p2908_p6, %p4069_p10  ;;  %s2913_s27 = scalar_lea.vmem %s2912_s30, 1024 }
  0x63   : > { %2178 = vmatprep.subr.bf16.mxu1 %v2177_v17  ;;  %v426_v25 = vld [vmem:[%s3176_s4 + $0x6f8] sm:$0xff]  ;;  %v1989_v28 = vpack.c.bf16 %v234_v23, %v228_v22  ;;  %v233_v31 = vld [vmem:[%s3176_s4 + $0xf0] sm:$0xff]  ;;  %v419_v32 = vld [vmem:[%s3176_s4 + $0x6c0] sm:$0xff]  ;;  %p2914_p0 = scmp.lt.s32.totalorder %s3998_s26, %s2912_s30  ;;  %p2915_p9 = scmp.lt.s32.totalorder %s2913_s27, %s2907_s12 }
  0x64   : > { %v2181_v29 = vpack.c.bf16 %v426_v25, %v420_v24  ;;  %v425_v33 = vld [vmem:[%s3176_s4 + $0x6f0] sm:$0xff]  ;;  %v240_v34 = vld [vmem:[%s3176_s4 + $0x128] sm:$0xff]  ;;  %v246_v35 = vld [vmem:[%s3176_s4 + $0x158] sm:$0xff]  ;;  %v1991_v38 = vpack.c.bf16 %v233_v31, %v227_v30  ;;  %p2910_p13 = pneg %p2909_p11 }
  0x65   : > { %v432_v36 = vld [vmem:[%s3176_s4 + $0x728] sm:$0xff]  ;;  %v438_v37 = vld [vmem:[%s3176_s4 + $0x758] sm:$0xff]  ;;  %v2183_v39 = vpack.c.bf16 %v425_v33, %v419_v32  ;;  %v1993_v40 = vpack.c.bf16 %v246_v35, %v240_v34  ;;  %v239_v42 = vld [vmem:[%s3176_s4 + $0x120] sm:$0xff]  ;;  %p2916_p3 = por %p2915_p9, %p2914_p0 }
  0x66   : > { %v2185_v41 = vpack.c.bf16 %v438_v37, %v432_v36  ;;  %v245_v43 = vld [vmem:[%s3176_s4 + $0x150] sm:$0xff]  ;;  %v431_v44 = vld [vmem:[%s3176_s4 + $0x720] sm:$0xff]  ;;  %v252_v46 = vld [vmem:[%s3176_s4 + $0x188] sm:$0xff] }
  0x67   : > { %v437_v45 = vld [vmem:[%s3176_s4 + $0x750] sm:$0xff]  ;;  %v258_v47 = vld [vmem:[%s3176_s4 + $0x1b8] sm:$0xff]  ;;  %v444_v48 = vld [vmem:[%s3176_s4 + $0x788] sm:$0xff]  ;;  %v1995_v50 = vpack.c.bf16 %v245_v43, %v239_v42  ;;  %p2917_p7 = pnand %p2916_p3, %p2910_p13 }
  0x68   : > { %v450_v49 = vld [vmem:[%s3176_s4 + $0x7b8] sm:$0xff]  ;;  %v2187_v51 = vpack.c.bf16 %v437_v45, %v431_v44  ;;  %v1997_v52 = vpack.c.bf16 %v258_v47, %v252_v46  ;;  %v251_v54 = vld [vmem:[%s3176_s4 + $0x180] sm:$0xff]  ;;  %v257_v55 = vld [vmem:[%s3176_s4 + $0x1b0] sm:$0xff] }
  0x69   : > { %1988 = vmatpush1.bf16.xpose.msra.mxu0 %v1987_v26  ;;  %v2189_v53 = vpack.c.bf16 %v450_v49, %v444_v48  ;;  %v443_v56 = vld [vmem:[%s3176_s4 + $0x780] sm:$0xff]  ;;  %v449_v57 = vld [vmem:[%s3176_s4 + $0x7b0] sm:$0xff]  ;;  %v264_v58 = vld [vmem:[%s3176_s4 + $0x1e8] sm:$0xff]  ;;  %v1999_v62 = vpack.c.bf16 %v257_v55, %v251_v54 }
  0x6a   : > { %2180 = vmatpush1.bf16.xpose.msra.mxu1 %v2179_v27  ;;  %1990 = vmatprep.subr.bf16.mxu0 %v1989_v28  ;;  %v270_v59 = vld [vmem:[%s3176_s4 + $0x218] sm:$0xff]  ;;  %v456_v60 = vld [vmem:[%s3176_s4 + $0x7e8] sm:$0xff]  ;;  %v2191_v63 = vpack.c.bf16 %v449_v57, %v443_v56  ;;  %v263_v2 = vld [vmem:[%s3176_s4 + $0x1e0] sm:$0xff] }
  0x6b   : > { %2182 = vmatprep.subr.bf16.mxu1 %v2181_v29  ;;  %v462_v61 = vld [vmem:[%s3176_s4 + $0x818] sm:$0xff]  ;;  %v2001_v0 = vpack.c.bf16 %v270_v59, %v264_v58  ;;  %v269_v3 = vld [vmem:[%s3176_s4 + $0x210] sm:$0xff]  ;;  %v455_v4 = vld [vmem:[%s3176_s4 + $0x7e0] sm:$0xff] }
  0x6c   : > { %v2193_v1 = vpack.c.bf16 %v462_v61, %v456_v60  ;;  %v461_v5 = vld [vmem:[%s3176_s4 + $0x810] sm:$0xff]  ;;  %v276_v6 = vld [vmem:[%s3176_s4 + $0x248] sm:$0xff]  ;;  %v282_v7 = vld [vmem:[%s3176_s4 + $0x278] sm:$0xff]  ;;  %v2003_v10 = vpack.c.bf16 %v269_v3, %v263_v2 }
  0x6d   : > { %v468_v8 = vld [vmem:[%s3176_s4 + $0x848] sm:$0xff]  ;;  %v474_v9 = vld [vmem:[%s3176_s4 + $0x878] sm:$0xff]  ;;  %v2195_v11 = vpack.c.bf16 %v461_v5, %v455_v4  ;;  %v2005_v12 = vpack.c.bf16 %v282_v7, %v276_v6  ;;  %v275_v16 = vld [vmem:[%s3176_s4 + $0x240] sm:$0xff] }
  0x6e   : > { %v2197_v13 = vpack.c.bf16 %v474_v9, %v468_v8  ;;  %v3234_v14 = vld [vmem:[#allocation2] sm:$0xff]  ;;  %v281_v17 = vld [vmem:[%s3176_s4 + $0x270] sm:$0xff]  ;;  %v467_v18 = vld [vmem:[%s3176_s4 + $0x840] sm:$0xff] }
  0x6f   : > { %v3238_v15 = vcombine.high %v3234_v14, %v3234_v14  ;;  %v473_v19 = vld [vmem:[%s3176_s4 + $0x870] sm:$0xff]  ;;  %v288_v20 = vld [vmem:[%s3176_s4 + $0x2a8] sm:$0xff]  ;;  %v294_v21 = vld [vmem:[%s3176_s4 + $0x2d8] sm:$0xff]  ;;  %v2007_v24 = vpack.c.bf16 %v281_v17, %v275_v16 }
  0x70   : > { %v480_v22 = vld [vmem:[%s3176_s4 + $0x8a8] sm:$0xff]  ;;  %v486_v23 = vld [vmem:[%s3176_s4 + $0x8d8] sm:$0xff]  ;;  %v2199_v25 = vpack.c.bf16 %v473_v19, %v467_v18  ;;  %v2009_v26 = vpack.c.bf16 %v294_v21, %v288_v20  ;;  %v287_v28 = vld [vmem:[%s3176_s4 + $0x2a0] sm:$0xff] }
  0x71   : > { %1992 = vmatpush1.bf16.xpose.msra.mxu0 %v1991_v38  ;;  %1044 = vmatprep.mubr.f32.mxu0 %v3238_v15  ;;  %v2201_v27 = vpack.c.bf16 %v486_v23, %v480_v22  ;;  %v293_v29 = vld [vmem:[%s3176_s4 + $0x2d0] sm:$0xff]  ;;  %v479_v30 = vld [vmem:[%s3176_s4 + $0x8a0] sm:$0xff]  ;;  %v300_v32 = vld [vmem:[%s3176_s4 + $0x308] sm:$0xff] }
  0x72   : > { %2184 = vmatpush1.bf16.xpose.msra.mxu1 %v2183_v39  ;;  %1994 = vmatprep.subr.bf16.mxu0 %v1993_v40  ;;  %v485_v31 = vld [vmem:[%s3176_s4 + $0x8d0] sm:$0xff]  ;;  %v306_v33 = vld [vmem:[%s3176_s4 + $0x338] sm:$0xff]  ;;  %v492_v34 = vld [vmem:[%s3176_s4 + $0x908] sm:$0xff]  ;;  %v2011_v36 = vpack.c.bf16 %v293_v29, %v287_v28 }
  0x73   : > { %2186 = vmatprep.subr.bf16.mxu1 %v2185_v41  ;;  %1257 = vmatprep.mubr.f32.mxu1 %v3238_v15  ;;  %v498_v35 = vld [vmem:[%s3176_s4 + $0x938] sm:$0xff]  ;;  %v2203_v37 = vpack.c.bf16 %v485_v31, %v479_v30  ;;  %v2013_v38 = vpack.c.bf16 %v306_v33, %v300_v32  ;;  %v299_v40 = vld [vmem:[%s3176_s4 + $0x300] sm:$0xff]  ;;  %v305_v41 = vld [vmem:[%s3176_s4 + $0x330] sm:$0xff] }
  0x74   : > { %v2205_v39 = vpack.c.bf16 %v498_v35, %v492_v34  ;;  %v491_v42 = vld [vmem:[%s3176_s4 + $0x900] sm:$0xff]  ;;  %v497_v43 = vld [vmem:[%s3176_s4 + $0x930] sm:$0xff]  ;;  %v312_v44 = vld [vmem:[%s3176_s4 + $0x368] sm:$0xff]  ;;  %v2015_v48 = vpack.c.bf16 %v305_v41, %v299_v40 }
  0x75   : > { %v318_v45 = vld [vmem:[%s3176_s4 + $0x398] sm:$0xff]  ;;  %v504_v46 = vld [vmem:[%s3176_s4 + $0x968] sm:$0xff]  ;;  %v2207_v49 = vpack.c.bf16 %v497_v43, %v491_v42  ;;  %v503_v54 = vld [vmem:[%s3176_s4 + $0x960] sm:$0xff] }
  0x76   : > { %v510_v47 = vld [vmem:[%s3176_s4 + $0x998] sm:$0xff]  ;;  %v509_v55 = vld [vmem:[%s3176_s4 + $0x990] sm:$0xff]  ;;  %v324_v56 = vld [vmem:[%s3176_s4 + $0x3c8] sm:$0xff] }
  0x77   : > { %v330_v57 = vld [vmem:[%s3176_s4 + $0x3f8] sm:$0xff]  ;;  %v516_v58 = vld [vmem:[%s3176_s4 + $0x9c8] sm:$0xff]  ;;  %v2211_v61 = vpack.c.bf16 %v509_v55, %v503_v54  ;;  %v515_v2 = vld [vmem:[%s3176_s4 + $0x9c0] sm:$0xff] }
  0x78   : > { %v522_v59 = vld [vmem:[%s3176_s4 + $0x9f8] sm:$0xff]  ;;  %v521_v3 = vld [vmem:[%s3176_s4 + $0x9f0] sm:$0xff]  ;;  %v336_v4 = vld [vmem:[%s3176_s4 + $0x428] sm:$0xff] }
  0x79   : > { %1996 = vmatpush1.bf16.xpose.msra.mxu0 %v1995_v50  ;;  %v2017_v50 = vpack.c.bf16 %v318_v45, %v312_v44  ;;  %v342_v5 = vld [vmem:[%s3176_s4 + $0x458] sm:$0xff]  ;;  %v528_v6 = vld [vmem:[%s3176_s4 + $0xa28] sm:$0xff]  ;;  %v2215_v9 = vpack.c.bf16 %v521_v3, %v515_v2  ;;  %v527_v16 = vld [vmem:[%s3176_s4 + $0xa20] sm:$0xff] }
  0x7a   : > { %2188 = vmatpush1.bf16.xpose.msra.mxu1 %v2187_v51  ;;  %1998 = vmatprep.subr.bf16.mxu0 %v1997_v52  ;;  %v2209_v51 = vpack.c.bf16 %v510_v47, %v504_v46  ;;  %v311_v52 = vld [vmem:[%s3176_s4 + $0x360] sm:$0xff]  ;;  %v534_v7 = vld [vmem:[%s3176_s4 + $0xa58] sm:$0xff]  ;;  %v533_v17 = vld [vmem:[%s3176_s4 + $0xa50] sm:$0xff] }
  0x7b   : > { %2190 = vmatprep.subr.bf16.mxu1 %v2189_v53  ;;  %v317_v53 = vld [vmem:[%s3176_s4 + $0x390] sm:$0xff]  ;;  %v348_v18 = vld [vmem:[%s3176_s4 + $0x488] sm:$0xff]  ;;  %v354_v19 = vld [vmem:[%s3176_s4 + $0x4b8] sm:$0xff]  ;;  %v2219_v23 = vpack.c.bf16 %v533_v17, %v527_v16 }
  0x7c   : > { %v2019_v60 = vpack.c.bf16 %v317_v53, %v311_v52  ;;  %v540_v20 = vld [vmem:[%s3176_s4 + $0xa88] sm:$0xff]  ;;  %v546_v21 = vld [vmem:[%s3176_s4 + $0xab8] sm:$0xff]  ;;  %v539_v28 = vld [vmem:[%s3176_s4 + $0xa80] sm:$0xff] }
  0x7d   : > { %v545_v29 = vld [vmem:[%s3176_s4 + $0xab0] sm:$0xff]  ;;  %v360_v30 = vld [vmem:[%s3176_s4 + $0x4e8] sm:$0xff]  ;;  %v366_v31 = vld [vmem:[%s3176_s4 + $0x518] sm:$0xff] }
  0x7e   : > { %v552_v32 = vld [vmem:[%s3176_s4 + $0xae8] sm:$0xff]  ;;  %v558_v33 = vld [vmem:[%s3176_s4 + $0xb18] sm:$0xff]  ;;  %v2223_v35 = vpack.c.bf16 %v545_v29, %v539_v28  ;;  %v551_v40 = vld [vmem:[%s3176_s4 + $0xae0] sm:$0xff] }
  0x7f   : > { %v557_v41 = vld [vmem:[%s3176_s4 + $0xb10] sm:$0xff]  ;;  %v372_v42 = vld [vmem:[%s3176_s4 + $0x548] sm:$0xff]  ;;  %v378_v43 = vld [vmem:[%s3176_s4 + $0x578] sm:$0xff] }
  0x80   : > { %v564_v44 = vld [vmem:[%s3176_s4 + $0xb48] sm:$0xff]  ;;  %v570_v45 = vld [vmem:[%s3176_s4 + $0xb78] sm:$0xff]  ;;  %v2227_v47 = vpack.c.bf16 %v557_v41, %v551_v40  ;;  %v563_v52 = vld [vmem:[%s3176_s4 + $0xb40] sm:$0xff] }
  0x81   : > { %2000 = vmatpush1.bf16.xpose.msra.mxu0 %v1999_v62  ;;  %v2021_v62 = vpack.c.bf16 %v330_v57, %v324_v56  ;;  %v569_v53 = vld [vmem:[%s3176_s4 + $0xb70] sm:$0xff]  ;;  %v384_v54 = vld [vmem:[%s3176_s4 + $0x5a8] sm:$0xff]  ;;  %v390_v55 = vld [vmem:[%s3176_s4 + $0x5d8] sm:$0xff] }
  0x82   : > { %2192 = vmatpush1.bf16.xpose.msra.mxu1 %v2191_v63  ;;  %2002 = vmatprep.subr.bf16.mxu0 %v2001_v0  ;;  %v2213_v63 = vpack.c.bf16 %v522_v59, %v516_v58  ;;  %v323_v0 = vld [vmem:[%s3176_s4 + $0x3c0] sm:$0xff]  ;;  %v576_v56 = vld [vmem:[%s3176_s4 + $0xba8] sm:$0xff]  ;;  %v582_v57 = vld [vmem:[%s3176_s4 + $0xbd8] sm:$0xff]  ;;  %v2231_v59 = vpack.c.bf16 %v569_v53, %v563_v52 }
  0x83   : > { %2194 = vmatprep.subr.bf16.mxu1 %v2193_v1  ;;  %v329_v1 = vld [vmem:[%s3176_s4 + $0x3f0] sm:$0xff]  ;;  %v206_v2 = vld [vmem:[%s3176_s4 + $0x18] sm:$0xff]  ;;  %v212_v3 = vld [vmem:[%s3176_s4 + $0x48] sm:$0xff] }
  0x84   : > { %v2023_v8 = vpack.c.bf16 %v329_v1, %v323_v0  ;;  %v575_v0 = vld [vmem:[%s3176_s4 + $0xba0] sm:$0xff]  ;;  %v581_v1 = vld [vmem:[%s3176_s4 + $0xbd0] sm:$0xff]  ;;  %v218_v16 = vld [vmem:[%s3176_s4 + $0x78] sm:$0xff] }
  0x85   : > { %v224_v17 = vld [vmem:[%s3176_s4 + $0xa8] sm:$0xff]  ;;  %v409_v28 = vld [vmem:[%s3176_s4 + $0x670] sm:$0xff]  ;;  %v415_v29 = vld [vmem:[%s3176_s4 + $0x6a0] sm:$0xff] }
  0x86   : > { %v427_v40 = vld [vmem:[%s3176_s4 + $0x700] sm:$0xff]  ;;  %v242_v41 = vld [vmem:[%s3176_s4 + $0x138] sm:$0xff] }
  0x87   : > { %v439_v52 = vld [vmem:[%s3176_s4 + $0x760] sm:$0xff]  ;;  %v254_v53 = vld [vmem:[%s3176_s4 + $0x198] sm:$0xff] }
  0x89   : > { %2004 = vmatpush1.bf16.xpose.msra.mxu0 %v2003_v10  ;;  %v2025_v10 = vpack.c.bf16 %v342_v5, %v336_v4  ;;  %v398_v4 = vld [vmem:[%s3176_s4 + $0x618] sm:$0xff]  ;;  %v404_v5 = vld [vmem:[%s3176_s4 + $0x648] sm:$0xff] }
  0x8a   : > { %2196 = vmatpush1.bf16.xpose.msra.mxu1 %v2195_v11  ;;  %2006 = vmatprep.subr.bf16.mxu0 %v2005_v12  ;;  %v2217_v11 = vpack.c.bf16 %v534_v7, %v528_v6  ;;  %v335_v12 = vld [vmem:[%s3176_s4 + $0x420] sm:$0xff]  ;;  %v2235_v7 = vpack.c.bf16 %v581_v1, %v575_v0  ;;  %v266_v1 = vld [vmem:[%s3176_s4 + $0x1f8] sm:$0xff] }
  0x8b   : > { %2198 = vmatprep.subr.bf16.mxu1 %v2197_v13  ;;  %v341_v13 = vld [vmem:[%s3176_s4 + $0x450] sm:$0xff]  ;;  %v451_v0 = vld [vmem:[%s3176_s4 + $0x7c0] sm:$0xff] }
  0x8c   : > { %v2027_v22 = vpack.c.bf16 %v341_v13, %v335_v12  ;;  %v397_v12 = vld [vmem:[%s3176_s4 + $0x610] sm:$0xff]  ;;  %v403_v13 = vld [vmem:[%s3176_s4 + $0x640] sm:$0xff] }
  0x91   : > { %2008 = vmatpush1.bf16.xpose.msra.mxu0 %v2007_v24  ;;  %v2029_v24 = vpack.c.bf16 %v354_v19, %v348_v18  ;;  %v410_v18 = vld [vmem:[%s3176_s4 + $0x678] sm:$0xff]  ;;  %v416_v19 = vld [vmem:[%s3176_s4 + $0x6a8] sm:$0xff] }
  0x92   : > { %2200 = vmatpush1.bf16.xpose.msra.mxu1 %v2199_v25  ;;  %2010 = vmatprep.subr.bf16.mxu0 %v2009_v26  ;;  %v2221_v25 = vpack.c.bf16 %v546_v21, %v540_v20  ;;  %v347_v26 = vld [vmem:[%s3176_s4 + $0x480] sm:$0xff]  ;;  %v3330_v20 = vld [vmem:[#allocation2 + $0x8] sm:$0xff] }
  0x93   : > { %2202 = vmatprep.subr.bf16.mxu1 %v2201_v27  ;;  %v353_v27 = vld [vmem:[%s3176_s4 + $0x4b0] sm:$0xff] }
  0x94   : > { %v2031_v34 = vpack.c.bf16 %v353_v27, %v347_v26  ;;  %v217_v26 = vld [vmem:[%s3176_s4 + $0x70] sm:$0xff]  ;;  %v223_v27 = vld [vmem:[%s3176_s4 + $0xa0] sm:$0xff] }
  0x99   : > { %2012 = vmatpush1.bf16.xpose.msra.mxu0 %v2011_v36  ;;  %v2033_v36 = vpack.c.bf16 %v366_v31, %v360_v30  ;;  %v230_v30 = vld [vmem:[%s3176_s4 + $0xd8] sm:$0xff]  ;;  %v236_v31 = vld [vmem:[%s3176_s4 + $0x108] sm:$0xff] }
  0x9a   : > { %2204 = vmatpush1.bf16.xpose.msra.mxu1 %v2203_v37  ;;  %2014 = vmatprep.subr.bf16.mxu0 %v2013_v38  ;;  %v2225_v37 = vpack.c.bf16 %v558_v33, %v552_v32  ;;  %v359_v38 = vld [vmem:[%s3176_s4 + $0x4e0] sm:$0xff]  ;;  %v422_v32 = vld [vmem:[%s3176_s4 + $0x6d8] sm:$0xff]  ;;  %v428_v33 = vld [vmem:[%s3176_s4 + $0x708] sm:$0xff] }
  0x9b   : > { %2206 = vmatprep.subr.bf16.mxu1 %v2205_v39  ;;  %v365_v39 = vld [vmem:[%s3176_s4 + $0x510] sm:$0xff] }
  0x9c   : > { %v2035_v46 = vpack.c.bf16 %v365_v39, %v359_v38  ;;  %v235_v38 = vld [vmem:[%s3176_s4 + $0x100] sm:$0xff]  ;;  %v421_v39 = vld [vmem:[%s3176_s4 + $0x6d0] sm:$0xff] }
  0xa1   : > { %2016 = vmatpush1.bf16.xpose.msra.mxu0 %v2015_v48  ;;  %v2037_v48 = vpack.c.bf16 %v378_v43, %v372_v42  ;;  %v248_v42 = vld [vmem:[%s3176_s4 + $0x168] sm:$0xff]  ;;  %v434_v43 = vld [vmem:[%s3176_s4 + $0x738] sm:$0xff] }
  0xa2   : > { %2208 = vmatpush1.bf16.xpose.msra.mxu1 %v2207_v49  ;;  %2018 = vmatprep.subr.bf16.mxu0 %v2017_v50  ;;  %v2229_v49 = vpack.c.bf16 %v570_v45, %v564_v44  ;;  %v371_v50 = vld [vmem:[%s3176_s4 + $0x540] sm:$0xff]  ;;  %v440_v44 = vld [vmem:[%s3176_s4 + $0x768] sm:$0xff] }
  0xa3   : > { %2210 = vmatprep.subr.bf16.mxu1 %v2209_v51  ;;  %v377_v51 = vld [vmem:[%s3176_s4 + $0x570] sm:$0xff] }
  0xa4   : > { %v2039_v58 = vpack.c.bf16 %v377_v51, %v371_v50  ;;  %v247_v50 = vld [vmem:[%s3176_s4 + $0x160] sm:$0xff]  ;;  %v433_v51 = vld [vmem:[%s3176_s4 + $0x730] sm:$0xff] }
  0xa9   : > { %2020 = vmatpush1.bf16.xpose.msra.mxu0 %v2019_v60  ;;  %v2041_v60 = vpack.c.bf16 %v390_v55, %v384_v54  ;;  %v260_v54 = vld [vmem:[%s3176_s4 + $0x1c8] sm:$0xff]  ;;  %v446_v55 = vld [vmem:[%s3176_s4 + $0x798] sm:$0xff] }
  0xaa   : > { %2212 = vmatpush1.bf16.xpose.msra.mxu1 %v2211_v61  ;;  %2022 = vmatprep.subr.bf16.mxu0 %v2021_v62  ;;  %v2233_v61 = vpack.c.bf16 %v582_v57, %v576_v56  ;;  %v383_v62 = vld [vmem:[%s3176_s4 + $0x5a0] sm:$0xff]  ;;  %v452_v56 = vld [vmem:[%s3176_s4 + $0x7c8] sm:$0xff] }
  0xab   : > { %2214 = vmatprep.subr.bf16.mxu1 %v2213_v63  ;;  %v389_v63 = vld [vmem:[%s3176_s4 + $0x5d0] sm:$0xff] }
  0xac   : > { %v2043_v6 = vpack.c.bf16 %v389_v63, %v383_v62  ;;  %v259_v62 = vld [vmem:[%s3176_s4 + $0x1c0] sm:$0xff]  ;;  %v445_v63 = vld [vmem:[%s3176_s4 + $0x790] sm:$0xff] }
  0xb1   : > { %2024 = vmatpush1.bf16.xpose.msra.mxu0 %v2023_v8  ;;  %v2045_v8 = vpack.c.bf16 %v212_v3, %v206_v2  ;;  %v272_v2 = vld [vmem:[%s3176_s4 + $0x228] sm:$0xff]  ;;  %v458_v3 = vld [vmem:[%s3176_s4 + $0x7f8] sm:$0xff] }
  0xb2   : > { %2216 = vmatpush1.bf16.xpose.msra.mxu1 %v2215_v9  ;;  %2026 = vmatprep.subr.bf16.mxu0 %v2025_v10  ;;  %v2237_v9 = vpack.c.bf16 %v404_v5, %v398_v4  ;;  %v205_v10 = vld [vmem:[%s3176_s4 + $0x10] sm:$0xff]  ;;  %v464_v4 = vld [vmem:[%s3176_s4 + $0x828] sm:$0xff] }
  0xb3   : > { %2218 = vmatprep.subr.bf16.mxu1 %v2217_v11  ;;  %v211_v11 = vld [vmem:[%s3176_s4 + $0x40] sm:$0xff] }
  0xb4   : > { %v2047_v21 = vpack.c.bf16 %v211_v11, %v205_v10  ;;  %v271_v10 = vld [vmem:[%s3176_s4 + $0x220] sm:$0xff]  ;;  %v457_v11 = vld [vmem:[%s3176_s4 + $0x7f0] sm:$0xff] }
  0xb9   : > { %2028 = vmatpush1.bf16.xpose.msra.mxu0 %v2027_v22  ;;  %v2239_v22 = vpack.c.bf16 %v403_v13, %v397_v12  ;;  %v463_v12 = vld [vmem:[%s3176_s4 + $0x820] sm:$0xff]  ;;  %v278_v13 = vld [vmem:[%s3176_s4 + $0x258] sm:$0xff] }
  0xba   : > { %2220 = vmatpush1.bf16.xpose.msra.mxu1 %v2219_v23  ;;  %2030 = vmatprep.subr.bf16.mxu0 %v2029_v24  ;;  %v2049_v23 = vpack.c.bf16 %v224_v17, %v218_v16  ;;  %v2241_v24 = vpack.c.bf16 %v416_v19, %v410_v18  ;;  %v284_v16 = vld [vmem:[%s3176_s4 + $0x288] sm:$0xff]  ;;  %v470_v17 = vld [vmem:[%s3176_s4 + $0x858] sm:$0xff] }
  0xbb   : > { %2222 = vmatprep.subr.bf16.mxu1 %v2221_v25  ;;  %v3334_v25 = vcombine.high %v3330_v20, %v3330_v20  ;;  %v476_v18 = vld [vmem:[%s3176_s4 + $0x888] sm:$0xff] }
  0xc1   : > { %2032 = vmatpush1.bf16.xpose.msra.mxu0 %v2031_v34  ;;  %v2243_v34 = vpack.c.bf16 %v415_v29, %v409_v28  ;;  %v475_v28 = vld [vmem:[%s3176_s4 + $0x880] sm:$0xff]  ;;  %v290_v29 = vld [vmem:[%s3176_s4 + $0x2b8] sm:$0xff] }
  0xc2   : > { %2224 = vmatpush1.bf16.xpose.msra.mxu1 %v2223_v35  ;;  %2034 = vmatprep.subr.bf16.mxu0 %v2033_v36  ;;  %v2053_v35 = vpack.c.bf16 %v236_v31, %v230_v30  ;;  %v2245_v36 = vpack.c.bf16 %v428_v33, %v422_v32  ;;  %v296_v30 = vld [vmem:[%s3176_s4 + $0x2e8] sm:$0xff]  ;;  %v482_v31 = vld [vmem:[%s3176_s4 + $0x8b8] sm:$0xff] }
  0xc3   : > { %2226 = vmatprep.subr.bf16.mxu1 %v2225_v37  ;;  %v229_v37 = vld [vmem:[%s3176_s4 + $0xd0] sm:$0xff]  ;;  %v488_v32 = vld [vmem:[%s3176_s4 + $0x8e8] sm:$0xff] }
  0xc4   : > { %v2055_v45 = vpack.c.bf16 %v235_v38, %v229_v37  ;;  %v295_v37 = vld [vmem:[%s3176_s4 + $0x2e0] sm:$0xff]  ;;  %v481_v38 = vld [vmem:[%s3176_s4 + $0x8b0] sm:$0xff] }
  0xc9   : > { %2036 = vmatpush1.bf16.xpose.msra.mxu0 %v2035_v46  ;;  %v2247_v46 = vpack.c.bf16 %v427_v40, %v421_v39  ;;  %v487_v39 = vld [vmem:[%s3176_s4 + $0x8e0] sm:$0xff]  ;;  %v302_v40 = vld [vmem:[%s3176_s4 + $0x318] sm:$0xff] }
  0xca   : > { %2228 = vmatpush1.bf16.xpose.msra.mxu1 %v2227_v47  ;;  %2038 = vmatprep.subr.bf16.mxu0 %v2037_v48  ;;  %v2057_v47 = vpack.c.bf16 %v248_v42, %v242_v41  ;;  %v2249_v48 = vpack.c.bf16 %v440_v44, %v434_v43  ;;  %v308_v41 = vld [vmem:[%s3176_s4 + $0x348] sm:$0xff]  ;;  %v494_v42 = vld [vmem:[%s3176_s4 + $0x918] sm:$0xff] }
  0xcb   : > { %2230 = vmatprep.subr.bf16.mxu1 %v2229_v49  ;;  %v241_v49 = vld [vmem:[%s3176_s4 + $0x130] sm:$0xff]  ;;  %v500_v43 = vld [vmem:[%s3176_s4 + $0x948] sm:$0xff] }
  0xcc   : > { %v2059_v57 = vpack.c.bf16 %v247_v50, %v241_v49  ;;  %v307_v49 = vld [vmem:[%s3176_s4 + $0x340] sm:$0xff]  ;;  %v493_v50 = vld [vmem:[%s3176_s4 + $0x910] sm:$0xff] }
  0xd1   : > { %2040 = vmatpush1.bf16.xpose.msra.mxu0 %v2039_v58  ;;  %v2251_v58 = vpack.c.bf16 %v439_v52, %v433_v51  ;;  %v499_v51 = vld [vmem:[%s3176_s4 + $0x940] sm:$0xff]  ;;  %v314_v52 = vld [vmem:[%s3176_s4 + $0x378] sm:$0xff] }
  0xd2   : > { %2232 = vmatpush1.bf16.xpose.msra.mxu1 %v2231_v59  ;;  %2042 = vmatprep.subr.bf16.mxu0 %v2041_v60  ;;  %v2061_v59 = vpack.c.bf16 %v260_v54, %v254_v53  ;;  %v2253_v60 = vpack.c.bf16 %v452_v56, %v446_v55  ;;  %v320_v53 = vld [vmem:[%s3176_s4 + $0x3a8] sm:$0xff]  ;;  %v506_v54 = vld [vmem:[%s3176_s4 + $0x978] sm:$0xff] }
  0xd3   : > { %2234 = vmatprep.subr.bf16.mxu1 %v2233_v61  ;;  %v253_v61 = vld [vmem:[%s3176_s4 + $0x190] sm:$0xff]  ;;  %v512_v55 = vld [vmem:[%s3176_s4 + $0x9a8] sm:$0xff] }
  0xd4   : > { %v2063_v5 = vpack.c.bf16 %v259_v62, %v253_v61  ;;  %v319_v61 = vld [vmem:[%s3176_s4 + $0x3a0] sm:$0xff]  ;;  %v505_v62 = vld [vmem:[%s3176_s4 + $0x970] sm:$0xff] }
  0xd9   : > { %2044 = vmatpush1.bf16.xpose.msra.mxu0 %v2043_v6  ;;  %v2255_v6 = vpack.c.bf16 %v451_v0, %v445_v63  ;;  %v511_v63 = vld [vmem:[%s3176_s4 + $0x9a0] sm:$0xff]  ;;  %v326_v0 = vld [vmem:[%s3176_s4 + $0x3d8] sm:$0xff] }
  0xda   : > { %2236 = vmatpush1.bf16.xpose.msra.mxu1 %v2235_v7  ;;  %2046 = vmatprep.subr.bf16.mxu0 %v2045_v8  ;;  %v2065_v7 = vpack.c.bf16 %v272_v2, %v266_v1  ;;  %v2257_v8 = vpack.c.bf16 %v464_v4, %v458_v3  ;;  %v332_v1 = vld [vmem:[%s3176_s4 + $0x408] sm:$0xff]  ;;  %v518_v2 = vld [vmem:[%s3176_s4 + $0x9d8] sm:$0xff] }
  0xdb   : > { %2238 = vmatprep.subr.bf16.mxu1 %v2237_v9  ;;  %v265_v9 = vld [vmem:[%s3176_s4 + $0x1f0] sm:$0xff]  ;;  %v524_v3 = vld [vmem:[%s3176_s4 + $0xa08] sm:$0xff] }
  0xdc   : > { %v2067_v19 = vpack.c.bf16 %v271_v10, %v265_v9  ;;  %v331_v9 = vld [vmem:[%s3176_s4 + $0x400] sm:$0xff]  ;;  %v517_v10 = vld [vmem:[%s3176_s4 + $0x9d0] sm:$0xff] }
  0xe0   : > { %1045 = vmatmul.mubr.f32.vlgmr.msra.gmra.mrb[0].mxu0 %v3234_v14 }
  0xe1   : > { %2048 = vmatpush1.bf16.xpose.msra.mxu0 %v2047_v21  ;;  %1258 = vmatmul.mubr.f32.vlgmr.msra.gmra.mrb[0].mxu1 %v3234_v14  ;;  %v2051_v14 = vpack.c.bf16 %v223_v27, %v217_v26  ;;  %v2259_v21 = vpack.c.bf16 %v463_v12, %v457_v11  ;;  %v283_v26 = vld [vmem:[%s3176_s4 + $0x280] sm:$0xff]  ;;  %v469_v27 = vld [vmem:[%s3176_s4 + $0x850] sm:$0xff]  ;;  %v338_v12 = vld [vmem:[%s3176_s4 + $0x438] sm:$0xff] }
  0xe2   : > { %2240 = vmatpush1.bf16.xpose.msra.mxu1 %v2239_v22  ;;  %2050 = vmatprep.subr.bf16.mxu0 %v2049_v23  ;;  %v2069_v22 = vpack.c.bf16 %v284_v16, %v278_v13  ;;  %v2261_v23 = vpack.c.bf16 %v476_v18, %v470_v17  ;;  %v523_v11 = vld [vmem:[%s3176_s4 + $0xa00] sm:$0xff]  ;;  %v344_v13 = vld [vmem:[%s3176_s4 + $0x468] sm:$0xff]  ;;  %v530_v16 = vld [vmem:[%s3176_s4 + $0xa38] sm:$0xff] }
  0xe3   : > { %2242 = vmatprep.subr.bf16.mxu1 %v2241_v24  ;;  %1115 = vmatprep.mubr.f32.mxu0 %v3334_v25  ;;  %v277_v24 = vld [vmem:[%s3176_s4 + $0x250] sm:$0xff]  ;;  %v536_v17 = vld [vmem:[%s3176_s4 + $0xa68] sm:$0xff] }
  0xe4   : > { %1328 = vmatprep.mubr.f32.mxu1 %v3334_v25  ;;  %v2071_v33 = vpack.c.bf16 %v283_v26, %v277_v24  ;;  %v343_v24 = vld [vmem:[%s3176_s4 + $0x460] sm:$0xff]  ;;  %v529_v26 = vld [vmem:[%s3176_s4 + $0xa30] sm:$0xff] }
  0xe9   : > { %2052 = vmatpush1.bf16.xpose.msra.mxu0 %v2051_v14  ;;  %v2263_v14 = vpack.c.bf16 %v475_v28, %v469_v27  ;;  %v535_v27 = vld [vmem:[%s3176_s4 + $0xa60] sm:$0xff]  ;;  %v350_v28 = vld [vmem:[%s3176_s4 + $0x498] sm:$0xff] }
  0xea   : > { %2244 = vmatpush1.bf16.xpose.msra.mxu1 %v2243_v34  ;;  %2054 = vmatprep.subr.bf16.mxu0 %v2053_v35  ;;  %v2073_v34 = vpack.c.bf16 %v296_v30, %v290_v29  ;;  %v2265_v35 = vpack.c.bf16 %v488_v32, %v482_v31  ;;  %v356_v29 = vld [vmem:[%s3176_s4 + $0x4c8] sm:$0xff]  ;;  %v542_v30 = vld [vmem:[%s3176_s4 + $0xa98] sm:$0xff] }
  0xeb   : > { %2246 = vmatprep.subr.bf16.mxu1 %v2245_v36  ;;  %v289_v36 = vld [vmem:[%s3176_s4 + $0x2b0] sm:$0xff]  ;;  %v548_v31 = vld [vmem:[%s3176_s4 + $0xac8] sm:$0xff] }
  0xec   : > { %v2075_v44 = vpack.c.bf16 %v295_v37, %v289_v36  ;;  %v355_v36 = vld [vmem:[%s3176_s4 + $0x4c0] sm:$0xff]  ;;  %v541_v37 = vld [vmem:[%s3176_s4 + $0xa90] sm:$0xff] }
  0xf1   : > { %2056 = vmatpush1.bf16.xpose.msra.mxu0 %v2055_v45  ;;  %v2267_v45 = vpack.c.bf16 %v487_v39, %v481_v38  ;;  %v547_v38 = vld [vmem:[%s3176_s4 + $0xac0] sm:$0xff]  ;;  %v362_v39 = vld [vmem:[%s3176_s4 + $0x4f8] sm:$0xff] }
  0xf2   : > { %2248 = vmatpush1.bf16.xpose.msra.mxu1 %v2247_v46  ;;  %2058 = vmatprep.subr.bf16.mxu0 %v2057_v47  ;;  %v2077_v46 = vpack.c.bf16 %v308_v41, %v302_v40  ;;  %v2269_v47 = vpack.c.bf16 %v500_v43, %v494_v42  ;;  %v368_v40 = vld [vmem:[%s3176_s4 + $0x528] sm:$0xff]  ;;  %v554_v41 = vld [vmem:[%s3176_s4 + $0xaf8] sm:$0xff] }
  0xf3   : > { %2250 = vmatprep.subr.bf16.mxu1 %v2249_v48  ;;  %v301_v48 = vld [vmem:[%s3176_s4 + $0x310] sm:$0xff]  ;;  %v560_v42 = vld [vmem:[%s3176_s4 + $0xb28] sm:$0xff] }
  0xf4   : > { %v2079_v56 = vpack.c.bf16 %v307_v49, %v301_v48  ;;  %v367_v48 = vld [vmem:[%s3176_s4 + $0x520] sm:$0xff]  ;;  %v553_v49 = vld [vmem:[%s3176_s4 + $0xaf0] sm:$0xff] }
  0xf9   : > { %2060 = vmatpush1.bf16.xpose.msra.mxu0 %v2059_v57  ;;  %v2271_v57 = vpack.c.bf16 %v499_v51, %v493_v50  ;;  %v559_v50 = vld [vmem:[%s3176_s4 + $0xb20] sm:$0xff]  ;;  %v374_v51 = vld [vmem:[%s3176_s4 + $0x558] sm:$0xff] }
  0xfa   : > { %2252 = vmatpush1.bf16.xpose.msra.mxu1 %v2251_v58  ;;  %2062 = vmatprep.subr.bf16.mxu0 %v2061_v59  ;;  %v2081_v58 = vpack.c.bf16 %v320_v53, %v314_v52  ;;  %v2273_v59 = vpack.c.bf16 %v512_v55, %v506_v54  ;;  %v380_v52 = vld [vmem:[%s3176_s4 + $0x588] sm:$0xff]  ;;  %v566_v53 = vld [vmem:[%s3176_s4 + $0xb58] sm:$0xff] }
  0xfb   : > { %2254 = vmatprep.subr.bf16.mxu1 %v2253_v60  ;;  %v313_v60 = vld [vmem:[%s3176_s4 + $0x370] sm:$0xff]  ;;  %v572_v54 = vld [vmem:[%s3176_s4 + $0xb88] sm:$0xff] }
  0xfc   : > { %v2083_v4 = vpack.c.bf16 %v319_v61, %v313_v60  ;;  %v379_v60 = vld [vmem:[%s3176_s4 + $0x580] sm:$0xff]  ;;  %v565_v61 = vld [vmem:[%s3176_s4 + $0xb50] sm:$0xff] }
 0x101   : > { %2064 = vmatpush1.bf16.xpose.msra.mxu0 %v2063_v5  ;;  %v2275_v5 = vpack.c.bf16 %v511_v63, %v505_v62  ;;  %v571_v62 = vld [vmem:[%s3176_s4 + $0xb80] sm:$0xff]  ;;  %v386_v63 = vld [vmem:[%s3176_s4 + $0x5b8] sm:$0xff] }
 0x102   : > { %2256 = vmatpush1.bf16.xpose.msra.mxu1 %v2255_v6  ;;  %2066 = vmatprep.subr.bf16.mxu0 %v2065_v7  ;;  %v2085_v6 = vpack.c.bf16 %v332_v1, %v326_v0  ;;  %v2277_v7 = vpack.c.bf16 %v524_v3, %v518_v2  ;;  %v392_v0 = vld [vmem:[%s3176_s4 + $0x5e8] sm:$0xff]  ;;  %v578_v1 = vld [vmem:[%s3176_s4 + $0xbb8] sm:$0xff] }
 0x103   : > { %2258 = vmatprep.subr.bf16.mxu1 %v2257_v8  ;;  %v325_v8 = vld [vmem:[%s3176_s4 + $0x3d0] sm:$0xff]  ;;  %v584_v2 = vld [vmem:[%s3176_s4 + $0xbe8] sm:$0xff] }
 0x104   : > { %v2087_v18 = vpack.c.bf16 %v331_v9, %v325_v8  ;;  %v391_v8 = vld [vmem:[%s3176_s4 + $0x5e0] sm:$0xff]  ;;  %v577_v9 = vld [vmem:[%s3176_s4 + $0xbb0] sm:$0xff] }
 0x109   : > { %2068 = vmatpush1.bf16.xpose.msra.mxu0 %v2067_v19  ;;  %v2279_v19 = vpack.c.bf16 %v523_v11, %v517_v10  ;;  %v583_v10 = vld [vmem:[%s3176_s4 + $0xbe0] sm:$0xff]  ;;  %v208_v11 = vld [vmem:[%s3176_s4 + $0x28] sm:$0xff] }
 0x10a   : > { %2260 = vmatpush1.bf16.xpose.msra.mxu1 %v2259_v21  ;;  %2070 = vmatprep.subr.bf16.mxu0 %v2069_v22  ;;  %v2089_v21 = vpack.c.bf16 %v344_v13, %v338_v12  ;;  %v2281_v22 = vpack.c.bf16 %v536_v17, %v530_v16  ;;  %v214_v12 = vld [vmem:[%s3176_s4 + $0x58] sm:$0xff]  ;;  %v400_v13 = vld [vmem:[%s3176_s4 + $0x628] sm:$0xff] }
 0x10b   : > { %2262 = vmatprep.subr.bf16.mxu1 %v2261_v23  ;;  %v337_v23 = vld [vmem:[%s3176_s4 + $0x430] sm:$0xff]  ;;  %v406_v16 = vld [vmem:[%s3176_s4 + $0x658] sm:$0xff] }
 0x10c   : > { %v2091_v32 = vpack.c.bf16 %v343_v24, %v337_v23  ;;  %v213_v23 = vld [vmem:[%s3176_s4 + $0x50] sm:$0xff]  ;;  %v399_v24 = vld [vmem:[%s3176_s4 + $0x620] sm:$0xff] }
 0x111   : > { %2072 = vmatpush1.bf16.xpose.msra.mxu0 %v2071_v33  ;;  %v2283_v33 = vpack.c.bf16 %v535_v27, %v529_v26  ;;  %v405_v26 = vld [vmem:[%s3176_s4 + $0x650] sm:$0xff]  ;;  %v220_v27 = vld [vmem:[%s3176_s4 + $0x88] sm:$0xff] }
 0x112   : > { %2264 = vmatpush1.bf16.xpose.msra.mxu1 %v2263_v14  ;;  %2074 = vmatprep.subr.bf16.mxu0 %v2073_v34  ;;  %v2093_v14 = vpack.c.bf16 %v356_v29, %v350_v28  ;;  %v2285_v34 = vpack.c.bf16 %v548_v31, %v542_v30  ;;  %v226_v28 = vld [vmem:[%s3176_s4 + $0xb8] sm:$0xff]  ;;  %v412_v29 = vld [vmem:[%s3176_s4 + $0x688] sm:$0xff] }
 0x113   : > { %2266 = vmatprep.subr.bf16.mxu1 %v2265_v35  ;;  %v349_v35 = vld [vmem:[%s3176_s4 + $0x490] sm:$0xff]  ;;  %v418_v30 = vld [vmem:[%s3176_s4 + $0x6b8] sm:$0xff] }
 0x114   : > { %v2095_v43 = vpack.c.bf16 %v355_v36, %v349_v35  ;;  %v3468_v31 = vld [vmem:[#allocation2 + $0x10] sm:$0xff]  ;;  %v219_v36 = vld [vmem:[%s3176_s4 + $0x80] sm:$0xff] }
 0x115   : > { %v3472_v35 = vcombine.high %v3468_v31, %v3468_v31 }
 0x119   : > { %2076 = vmatpush1.bf16.xpose.msra.mxu0 %v2075_v44  ;;  %v2287_v44 = vpack.c.bf16 %v547_v38, %v541_v37  ;;  %v225_v37 = vld [vmem:[%s3176_s4 + $0xb0] sm:$0xff]  ;;  %v411_v38 = vld [vmem:[%s3176_s4 + $0x680] sm:$0xff] }
 0x11a   : > { %2268 = vmatpush1.bf16.xpose.msra.mxu1 %v2267_v45  ;;  %2078 = vmatprep.subr.bf16.mxu0 %v2077_v46  ;;  %v2097_v45 = vpack.c.bf16 %v368_v40, %v362_v39  ;;  %v2289_v46 = vpack.c.bf16 %v560_v42, %v554_v41  ;;  %v417_v39 = vld [vmem:[%s3176_s4 + $0x6b0] sm:$0xff]  ;;  %v232_v40 = vld [vmem:[%s3176_s4 + $0xe8] sm:$0xff]  ;;  %v238_v41 = vld [vmem:[%s3176_s4 + $0x118] sm:$0xff] }
 0x11b   : > { %2270 = vmatprep.subr.bf16.mxu1 %v2269_v47  ;;  %v361_v47 = vld [vmem:[%s3176_s4 + $0x4f0] sm:$0xff]  ;;  %v424_v42 = vld [vmem:[%s3176_s4 + $0x6e8] sm:$0xff] }
 0x11c   : > { %v2099_v55 = vpack.c.bf16 %v367_v48, %v361_v47  ;;  %v231_v47 = vld [vmem:[%s3176_s4 + $0xe0] sm:$0xff]  ;;  %v237_v48 = vld [vmem:[%s3176_s4 + $0x110] sm:$0xff] }
 0x121   : > { %2080 = vmatpush1.bf16.xpose.msra.mxu0 %v2079_v56  ;;  %v2291_v56 = vpack.c.bf16 %v559_v50, %v553_v49  ;;  %v423_v49 = vld [vmem:[%s3176_s4 + $0x6e0] sm:$0xff]  ;;  %v429_v50 = vld [vmem:[%s3176_s4 + $0x710] sm:$0xff] }
 0x122   : > { %2272 = vmatpush1.bf16.xpose.msra.mxu1 %v2271_v57  ;;  %2082 = vmatprep.subr.bf16.mxu0 %v2081_v58  ;;  %v2101_v57 = vpack.c.bf16 %v380_v52, %v374_v51  ;;  %v2293_v58 = vpack.c.bf16 %v572_v54, %v566_v53  ;;  %v244_v51 = vld [vmem:[%s3176_s4 + $0x148] sm:$0xff]  ;;  %v250_v52 = vld [vmem:[%s3176_s4 + $0x178] sm:$0xff] }
 0x123   : > { %2274 = vmatprep.subr.bf16.mxu1 %v2273_v59  ;;  %v373_v59 = vld [vmem:[%s3176_s4 + $0x550] sm:$0xff]  ;;  %v436_v53 = vld [vmem:[%s3176_s4 + $0x748] sm:$0xff]  ;;  %v442_v54 = vld [vmem:[%s3176_s4 + $0x778] sm:$0xff] }
 0x124   : > { %v2103_v3 = vpack.c.bf16 %v379_v60, %v373_v59  ;;  %v243_v59 = vld [vmem:[%s3176_s4 + $0x140] sm:$0xff]  ;;  %v249_v60 = vld [vmem:[%s3176_s4 + $0x170] sm:$0xff] }
 0x129   : > { %2084 = vmatpush1.bf16.xpose.msra.mxu0 %v2083_v4  ;;  %v2295_v4 = vpack.c.bf16 %v571_v62, %v565_v61  ;;  %v435_v61 = vld [vmem:[%s3176_s4 + $0x740] sm:$0xff]  ;;  %v441_v62 = vld [vmem:[%s3176_s4 + $0x770] sm:$0xff] }
 0x12a   : > { %2276 = vmatpush1.bf16.xpose.msra.mxu1 %v2275_v5  ;;  %2086 = vmatprep.subr.bf16.mxu0 %v2085_v6  ;;  %v2105_v5 = vpack.c.bf16 %v392_v0, %v386_v63  ;;  %v2297_v6 = vpack.c.bf16 %v584_v2, %v578_v1  ;;  %v256_v63 = vld [vmem:[%s3176_s4 + $0x1a8] sm:$0xff]  ;;  %v262_v0 = vld [vmem:[%s3176_s4 + $0x1d8] sm:$0xff] }
 0x12b   : > { %2278 = vmatprep.subr.bf16.mxu1 %v2277_v7  ;;  %v385_v7 = vld [vmem:[%s3176_s4 + $0x5b0] sm:$0xff]  ;;  %v448_v1 = vld [vmem:[%s3176_s4 + $0x7a8] sm:$0xff]  ;;  %v454_v2 = vld [vmem:[%s3176_s4 + $0x7d8] sm:$0xff] }
 0x12c   : > { %v2107_v17 = vpack.c.bf16 %v391_v8, %v385_v7  ;;  %v255_v7 = vld [vmem:[%s3176_s4 + $0x1a0] sm:$0xff]  ;;  %v261_v8 = vld [vmem:[%s3176_s4 + $0x1d0] sm:$0xff] }
 0x131   : > { %2088 = vmatpush1.bf16.xpose.msra.mxu0 %v2087_v18  ;;  %v2299_v18 = vpack.c.bf16 %v583_v10, %v577_v9  ;;  %v447_v9 = vld [vmem:[%s3176_s4 + $0x7a0] sm:$0xff]  ;;  %v453_v10 = vld [vmem:[%s3176_s4 + $0x7d0] sm:$0xff] }
 0x132   : > { %2280 = vmatpush1.bf16.xpose.msra.mxu1 %v2279_v19  ;;  %2090 = vmatprep.subr.bf16.mxu0 %v2089_v21  ;;  %v2109_v19 = vpack.c.bf16 %v214_v12, %v208_v11  ;;  %v2301_v21 = vpack.c.bf16 %v406_v16, %v400_v13  ;;  %v268_v11 = vld [vmem:[%s3176_s4 + $0x208] sm:$0xff]  ;;  %v274_v12 = vld [vmem:[%s3176_s4 + $0x238] sm:$0xff] }
 0x133   : > { %2282 = vmatprep.subr.bf16.mxu1 %v2281_v22  ;;  %v207_v22 = vld [vmem:[%s3176_s4 + $0x20] sm:$0xff]  ;;  %v460_v13 = vld [vmem:[%s3176_s4 + $0x808] sm:$0xff]  ;;  %v466_v16 = vld [vmem:[%s3176_s4 + $0x838] sm:$0xff] }
 0x139   : > { %2092 = vmatpush1.bf16.xpose.msra.mxu0 %v2091_v32  ;;  %v2111_v32 = vpack.c.bf16 %v213_v23, %v207_v22  ;;  %v267_v22 = vld [vmem:[%s3176_s4 + $0x200] sm:$0xff]  ;;  %v273_v23 = vld [vmem:[%s3176_s4 + $0x230] sm:$0xff] }
 0x13a   : > { %2284 = vmatpush1.bf16.xpose.msra.mxu1 %v2283_v33  ;;  %2094 = vmatprep.subr.bf16.mxu0 %v2093_v14  ;;  %v2303_v33 = vpack.c.bf16 %v405_v26, %v399_v24  ;;  %v2113_v14 = vpack.c.bf16 %v226_v28, %v220_v27  ;;  %v459_v24 = vld [vmem:[%s3176_s4 + $0x800] sm:$0xff]  ;;  %v465_v26 = vld [vmem:[%s3176_s4 + $0x830] sm:$0xff]  ;;  %v280_v27 = vld [vmem:[%s3176_s4 + $0x268] sm:$0xff] }
 0x13b   : > { %2286 = vmatprep.subr.bf16.mxu1 %v2285_v34  ;;  %v2305_v34 = vpack.c.bf16 %v418_v30, %v412_v29  ;;  %v286_v28 = vld [vmem:[%s3176_s4 + $0x298] sm:$0xff]  ;;  %v472_v29 = vld [vmem:[%s3176_s4 + $0x868] sm:$0xff] }
 0x13c   : > { %v478_v30 = vld [vmem:[%s3176_s4 + $0x898] sm:$0xff] }
 0x141   : > { %2096 = vmatpush1.bf16.xpose.msra.mxu0 %v2095_v43  ;;  %v430_v43 = vld [vmem:[%s3176_s4 + $0x718] sm:$0xff] }
 0x142   : > { %2288 = vmatpush1.bf16.xpose.msra.mxu1 %v2287_v44  ;;  %2098 = vmatprep.subr.bf16.mxu0 %v2097_v45  ;;  %v2307_v44 = vpack.c.bf16 %v417_v39, %v411_v38  ;;  %v2117_v45 = vpack.c.bf16 %v238_v41, %v232_v40  ;;  %v471_v38 = vld [vmem:[%s3176_s4 + $0x860] sm:$0xff]  ;;  %v477_v39 = vld [vmem:[%s3176_s4 + $0x890] sm:$0xff]  ;;  %v292_v40 = vld [vmem:[%s3176_s4 + $0x2c8] sm:$0xff] }
 0x143   : > { %2290 = vmatprep.subr.bf16.mxu1 %v2289_v46  ;;  %v2309_v46 = vpack.c.bf16 %v430_v43, %v424_v42  ;;  %v298_v41 = vld [vmem:[%s3176_s4 + $0x2f8] sm:$0xff]  ;;  %v484_v42 = vld [vmem:[%s3176_s4 + $0x8c8] sm:$0xff] }
 0x144   : > { %v490_v43 = vld [vmem:[%s3176_s4 + $0x8f8] sm:$0xff] }
 0x149   : > { %2100 = vmatpush1.bf16.xpose.msra.mxu0 %v2099_v55  ;;  %v2119_v55 = vpack.c.bf16 %v237_v48, %v231_v47  ;;  %v291_v47 = vld [vmem:[%s3176_s4 + $0x2c0] sm:$0xff]  ;;  %v297_v48 = vld [vmem:[%s3176_s4 + $0x2f0] sm:$0xff] }
 0x14a   : > { %2292 = vmatpush1.bf16.xpose.msra.mxu1 %v2291_v56  ;;  %2102 = vmatprep.subr.bf16.mxu0 %v2101_v57  ;;  %v2311_v56 = vpack.c.bf16 %v429_v50, %v423_v49  ;;  %v2121_v57 = vpack.c.bf16 %v250_v52, %v244_v51  ;;  %v483_v49 = vld [vmem:[%s3176_s4 + $0x8c0] sm:$0xff]  ;;  %v489_v50 = vld [vmem:[%s3176_s4 + $0x8f0] sm:$0xff]  ;;  %v304_v51 = vld [vmem:[%s3176_s4 + $0x328] sm:$0xff] }
 0x14b   : > { %2294 = vmatprep.subr.bf16.mxu1 %v2293_v58  ;;  %v2313_v58 = vpack.c.bf16 %v442_v54, %v436_v53  ;;  %v310_v52 = vld [vmem:[%s3176_s4 + $0x358] sm:$0xff]  ;;  %v496_v53 = vld [vmem:[%s3176_s4 + $0x928] sm:$0xff] }
 0x14c   : > { %v502_v54 = vld [vmem:[%s3176_s4 + $0x958] sm:$0xff] }
 0x151   : > { %2104 = vmatpush1.bf16.xpose.msra.mxu0 %v2103_v3  ;;  %v2123_v3 = vpack.c.bf16 %v249_v60, %v243_v59  ;;  %v303_v59 = vld [vmem:[%s3176_s4 + $0x320] sm:$0xff]  ;;  %v309_v60 = vld [vmem:[%s3176_s4 + $0x350] sm:$0xff] }
 0x152   : > { %2296 = vmatpush1.bf16.xpose.msra.mxu1 %v2295_v4  ;;  %2106 = vmatprep.subr.bf16.mxu0 %v2105_v5  ;;  %v2315_v4 = vpack.c.bf16 %v441_v62, %v435_v61  ;;  %v2125_v5 = vpack.c.bf16 %v262_v0, %v256_v63  ;;  %v495_v61 = vld [vmem:[%s3176_s4 + $0x920] sm:$0xff]  ;;  %v501_v62 = vld [vmem:[%s3176_s4 + $0x950] sm:$0xff]  ;;  %v316_v63 = vld [vmem:[%s3176_s4 + $0x388] sm:$0xff] }
 0x153   : > { %2298 = vmatprep.subr.bf16.mxu1 %v2297_v6  ;;  %v2317_v6 = vpack.c.bf16 %v454_v2, %v448_v1  ;;  %v322_v0 = vld [vmem:[%s3176_s4 + $0x3b8] sm:$0xff]  ;;  %v508_v1 = vld [vmem:[%s3176_s4 + $0x988] sm:$0xff] }
 0x154   : > { %v514_v2 = vld [vmem:[%s3176_s4 + $0x9b8] sm:$0xff] }
 0x159   : > { %2108 = vmatpush1.bf16.xpose.msra.mxu0 %v2107_v17  ;;  %v2127_v17 = vpack.c.bf16 %v261_v8, %v255_v7  ;;  %v315_v7 = vld [vmem:[%s3176_s4 + $0x380] sm:$0xff]  ;;  %v321_v8 = vld [vmem:[%s3176_s4 + $0x3b0] sm:$0xff] }
 0x15a   : > { %2300 = vmatpush1.bf16.xpose.msra.mxu1 %v2299_v18  ;;  %2110 = vmatprep.subr.bf16.mxu0 %v2109_v19  ;;  %v2319_v18 = vpack.c.bf16 %v453_v10, %v447_v9  ;;  %v2129_v19 = vpack.c.bf16 %v274_v12, %v268_v11  ;;  %v507_v9 = vld [vmem:[%s3176_s4 + $0x980] sm:$0xff]  ;;  %v513_v10 = vld [vmem:[%s3176_s4 + $0x9b0] sm:$0xff]  ;;  %v328_v11 = vld [vmem:[%s3176_s4 + $0x3e8] sm:$0xff] }
 0x15b   : > { %2302 = vmatprep.subr.bf16.mxu1 %v2301_v21  ;;  %v2321_v21 = vpack.c.bf16 %v466_v16, %v460_v13  ;;  %v334_v12 = vld [vmem:[%s3176_s4 + $0x418] sm:$0xff]  ;;  %v520_v13 = vld [vmem:[%s3176_s4 + $0x9e8] sm:$0xff] }
 0x15c   : > { %v526_v16 = vld [vmem:[%s3176_s4 + $0xa18] sm:$0xff] }
 0x160   : > { %1116 = vmatmul.mubr.f32.vlgmr.msra.gmra.mrb[0].mxu0 %v3330_v20 }
 0x161   : > { %2112 = vmatpush1.bf16.xpose.msra.mxu0 %v2111_v32  ;;  %1329 = vmatmul.mubr.f32.vlgmr.msra.gmra.mrb[0].mxu1 %v3330_v20  ;;  %v2115_v20 = vpack.c.bf16 %v225_v37, %v219_v36  ;;  %v2131_v32 = vpack.c.bf16 %v273_v23, %v267_v22  ;;  %v279_v36 = vld [vmem:[%s3176_s4 + $0x260] sm:$0xff]  ;;  %v285_v37 = vld [vmem:[%s3176_s4 + $0x290] sm:$0xff] }
 0x162   : > { %2304 = vmatpush1.bf16.xpose.msra.mxu1 %v2303_v33  ;;  %2114 = vmatprep.subr.bf16.mxu0 %v2113_v14  ;;  %v2323_v33 = vpack.c.bf16 %v465_v26, %v459_v24  ;;  %v2133_v14 = vpack.c.bf16 %v286_v28, %v280_v27  ;;  %v327_v22 = vld [vmem:[%s3176_s4 + $0x3e0] sm:$0xff]  ;;  %v333_v23 = vld [vmem:[%s3176_s4 + $0x410] sm:$0xff]  ;;  %v340_v27 = vld [vmem:[%s3176_s4 + $0x448] sm:$0xff] }
 0x163   : > { %2306 = vmatprep.subr.bf16.mxu1 %v2305_v34  ;;  %1186 = vmatprep.mubr.f32.mxu0 %v3472_v35  ;;  %v2325_v34 = vpack.c.bf16 %v478_v30, %v472_v29  ;;  %v519_v24 = vld [vmem:[%s3176_s4 + $0x9e0] sm:$0xff]  ;;  %v525_v26 = vld [vmem:[%s3176_s4 + $0xa10] sm:$0xff]  ;;  %v346_v28 = vld [vmem:[%s3176_s4 + $0x478] sm:$0xff] }
 0x164   : > { %1399 = vmatprep.mubr.f32.mxu1 %v3472_v35  ;;  %v532_v29 = vld [vmem:[%s3176_s4 + $0xa48] sm:$0xff]  ;;  %v538_v30 = vld [vmem:[%s3176_s4 + $0xa78] sm:$0xff] }
 0x169   : > { %2116 = vmatpush1.bf16.xpose.msra.mxu0 %v2115_v20  ;;  %v2135_v20 = vpack.c.bf16 %v285_v37, %v279_v36  ;;  %v339_v36 = vld [vmem:[%s3176_s4 + $0x440] sm:$0xff]  ;;  %v345_v37 = vld [vmem:[%s3176_s4 + $0x470] sm:$0xff] }
 0x16a   : > { %2308 = vmatpush1.bf16.xpose.msra.mxu1 %v2307_v44  ;;  %2118 = vmatprep.subr.bf16.mxu0 %v2117_v45  ;;  %v2327_v44 = vpack.c.bf16 %v477_v39, %v471_v38  ;;  %v2137_v45 = vpack.c.bf16 %v298_v41, %v292_v40  ;;  %v531_v38 = vld [vmem:[%s3176_s4 + $0xa40] sm:$0xff]  ;;  %v537_v39 = vld [vmem:[%s3176_s4 + $0xa70] sm:$0xff]  ;;  %v352_v40 = vld [vmem:[%s3176_s4 + $0x4a8] sm:$0xff] }
 0x16b   : > { %2310 = vmatprep.subr.bf16.mxu1 %v2309_v46  ;;  %v2329_v46 = vpack.c.bf16 %v490_v43, %v484_v42  ;;  %v358_v41 = vld [vmem:[%s3176_s4 + $0x4d8] sm:$0xff]  ;;  %v544_v42 = vld [vmem:[%s3176_s4 + $0xaa8] sm:$0xff] }
 0x16c   : > { %v550_v43 = vld [vmem:[%s3176_s4 + $0xad8] sm:$0xff] }
 0x171   : > { %2120 = vmatpush1.bf16.xpose.msra.mxu0 %v2119_v55  ;;  %v2139_v55 = vpack.c.bf16 %v297_v48, %v291_v47  ;;  %v351_v47 = vld [vmem:[%s3176_s4 + $0x4a0] sm:$0xff]  ;;  %v357_v48 = vld [vmem:[%s3176_s4 + $0x4d0] sm:$0xff] }
 0x172   : > { %2312 = vmatpush1.bf16.xpose.msra.mxu1 %v2311_v56  ;;  %2122 = vmatprep.subr.bf16.mxu0 %v2121_v57  ;;  %v2331_v56 = vpack.c.bf16 %v489_v50, %v483_v49  ;;  %v2141_v57 = vpack.c.bf16 %v310_v52, %v304_v51  ;;  %v543_v49 = vld [vmem:[%s3176_s4 + $0xaa0] sm:$0xff]  ;;  %v549_v50 = vld [vmem:[%s3176_s4 + $0xad0] sm:$0xff]  ;;  %v364_v51 = vld [vmem:[%s3176_s4 + $0x508] sm:$0xff] }
 0x173   : > { %2314 = vmatprep.subr.bf16.mxu1 %v2313_v58  ;;  %v2333_v58 = vpack.c.bf16 %v502_v54, %v496_v53  ;;  %v370_v52 = vld [vmem:[%s3176_s4 + $0x538] sm:$0xff]  ;;  %v556_v53 = vld [vmem:[%s3176_s4 + $0xb08] sm:$0xff] }
 0x174   : > { %v562_v54 = vld [vmem:[%s3176_s4 + $0xb38] sm:$0xff] }
 0x179   : > { %2124 = vmatpush1.bf16.xpose.msra.mxu0 %v2123_v3  ;;  %v2143_v3 = vpack.c.bf16 %v309_v60, %v303_v59  ;;  %v363_v59 = vld [vmem:[%s3176_s4 + $0x500] sm:$0xff]  ;;  %v369_v60 = vld [vmem:[%s3176_s4 + $0x530] sm:$0xff] }
 0x17a   : > { %2316 = vmatpush1.bf16.xpose.msra.mxu1 %v2315_v4  ;;  %2126 = vmatprep.subr.bf16.mxu0 %v2125_v5  ;;  %v2335_v4 = vpack.c.bf16 %v501_v62, %v495_v61  ;;  %v2145_v5 = vpack.c.bf16 %v322_v0, %v316_v63  ;;  %v555_v61 = vld [vmem:[%s3176_s4 + $0xb00] sm:$0xff]  ;;  %v561_v62 = vld [vmem:[%s3176_s4 + $0xb30] sm:$0xff]  ;;  %v376_v63 = vld [vmem:[%s3176_s4 + $0x568] sm:$0xff] }
 0x17b   : > { %2318 = vmatprep.subr.bf16.mxu1 %v2317_v6  ;;  %v2337_v6 = vpack.c.bf16 %v514_v2, %v508_v1  ;;  %v382_v0 = vld [vmem:[%s3176_s4 + $0x598] sm:$0xff]  ;;  %v568_v1 = vld [vmem:[%s3176_s4 + $0xb68] sm:$0xff] }
 0x17c   : > { %v574_v2 = vld [vmem:[%s3176_s4 + $0xb98] sm:$0xff] }
 0x181   : > { %2128 = vmatpush1.bf16.xpose.msra.mxu0 %v2127_v17  ;;  %v2147_v17 = vpack.c.bf16 %v321_v8, %v315_v7  ;;  %v375_v7 = vld [vmem:[%s3176_s4 + $0x560] sm:$0xff]  ;;  %v381_v8 = vld [vmem:[%s3176_s4 + $0x590] sm:$0xff] }
 0x182   : > { %2320 = vmatpush1.bf16.xpose.msra.mxu1 %v2319_v18  ;;  %2130 = vmatprep.subr.bf16.mxu0 %v2129_v19  ;;  %v2339_v18 = vpack.c.bf16 %v513_v10, %v507_v9  ;;  %v2149_v19 = vpack.c.bf16 %v334_v12, %v328_v11  ;;  %v567_v9 = vld [vmem:[%s3176_s4 + $0xb60] sm:$0xff]  ;;  %v573_v10 = vld [vmem:[%s3176_s4 + $0xb90] sm:$0xff]  ;;  %v388_v11 = vld [vmem:[%s3176_s4 + $0x5c8] sm:$0xff] }
 0x183   : > { %2322 = vmatprep.subr.bf16.mxu1 %v2321_v21  ;;  %v2341_v21 = vpack.c.bf16 %v526_v16, %v520_v13  ;;  %v394_v12 = vld [vmem:[%s3176_s4 + $0x5f8] sm:$0xff]  ;;  %v580_v13 = vld [vmem:[%s3176_s4 + $0xbc8] sm:$0xff] }
 0x184   : > { %v586_v16 = vld [vmem:[%s3176_s4 + $0xbf8] sm:$0xff] }
 0x189   : > { %2132 = vmatpush1.bf16.xpose.msra.mxu0 %v2131_v32  ;;  %v2151_v32 = vpack.c.bf16 %v333_v23, %v327_v22  ;;  %v387_v22 = vld [vmem:[%s3176_s4 + $0x5c0] sm:$0xff]  ;;  %v393_v23 = vld [vmem:[%s3176_s4 + $0x5f0] sm:$0xff] }
 0x18a   : > { %2324 = vmatpush1.bf16.xpose.msra.mxu1 %v2323_v33  ;;  %2134 = vmatprep.subr.bf16.mxu0 %v2133_v14  ;;  %v2343_v33 = vpack.c.bf16 %v525_v26, %v519_v24  ;;  %v2153_v14 = vpack.c.bf16 %v346_v28, %v340_v27  ;;  %v579_v24 = vld [vmem:[%s3176_s4 + $0xbc0] sm:$0xff]  ;;  %v585_v26 = vld [vmem:[%s3176_s4 + $0xbf0] sm:$0xff]  ;;  %v588_v27 = vld [vmem:[%s3176_s4 + $0xc08] sm:$0xff] }
 0x18b   : > { %2326 = vmatprep.subr.bf16.mxu1 %v2325_v34  ;;  %v2345_v34 = vpack.c.bf16 %v538_v30, %v532_v29  ;;  %v594_v28 = vld [vmem:[%s3176_s4 + $0xc38] sm:$0xff]  ;;  %v780_v29 = vld [vmem:[%s3176_s4 + $0x1208] sm:$0xff] }
 0x18c   : > { %v786_v30 = vld [vmem:[%s3176_s4 + $0x1238] sm:$0xff] }
 0x191   : > { %2136 = vmatpush1.bf16.xpose.msra.mxu0 %v2135_v20  ;;  %v2155_v20 = vpack.c.bf16 %v345_v37, %v339_v36  ;;  %v587_v36 = vld [vmem:[%s3176_s4 + $0xc00] sm:$0xff]  ;;  %v593_v37 = vld [vmem:[%s3176_s4 + $0xc30] sm:$0xff] }
 0x192   : > { %2328 = vmatpush1.bf16.xpose.msra.mxu1 %v2327_v44  ;;  %2138 = vmatprep.subr.bf16.mxu0 %v2137_v45  ;;  %v2347_v44 = vpack.c.bf16 %v537_v39, %v531_v38  ;;  %v2157_v45 = vpack.c.bf16 %v358_v41, %v352_v40  ;;  %v779_v38 = vld [vmem:[%s3176_s4 + $0x1200] sm:$0xff]  ;;  %v785_v39 = vld [vmem:[%s3176_s4 + $0x1230] sm:$0xff]  ;;  %v600_v40 = vld [vmem:[%s3176_s4 + $0xc68] sm:$0xff] }
 0x193   : > { %2330 = vmatprep.subr.bf16.mxu1 %v2329_v46  ;;  %v2349_v46 = vpack.c.bf16 %v550_v43, %v544_v42  ;;  %v606_v41 = vld [vmem:[%s3176_s4 + $0xc98] sm:$0xff]  ;;  %v792_v42 = vld [vmem:[%s3176_s4 + $0x1268] sm:$0xff] }
 0x194   : > { %v798_v43 = vld [vmem:[%s3176_s4 + $0x1298] sm:$0xff] }
 0x199   : > { %2140 = vmatpush1.bf16.xpose.msra.mxu0 %v2139_v55  ;;  %v2159_v55 = vpack.c.bf16 %v357_v48, %v351_v47  ;;  %v599_v47 = vld [vmem:[%s3176_s4 + $0xc60] sm:$0xff]  ;;  %v605_v48 = vld [vmem:[%s3176_s4 + $0xc90] sm:$0xff] }
 0x19a   : > { %2332 = vmatpush1.bf16.xpose.msra.mxu1 %v2331_v56  ;;  %2142 = vmatprep.subr.bf16.mxu0 %v2141_v57  ;;  %v2351_v56 = vpack.c.bf16 %v549_v50, %v543_v49  ;;  %v2161_v57 = vpack.c.bf16 %v370_v52, %v364_v51  ;;  %v791_v49 = vld [vmem:[%s3176_s4 + $0x1260] sm:$0xff]  ;;  %v797_v50 = vld [vmem:[%s3176_s4 + $0x1290] sm:$0xff]  ;;  %v612_v51 = vld [vmem:[%s3176_s4 + $0xcc8] sm:$0xff] }
 0x19b   : > { %2334 = vmatprep.subr.bf16.mxu1 %v2333_v58  ;;  %v2353_v58 = vpack.c.bf16 %v562_v54, %v556_v53  ;;  %v618_v52 = vld [vmem:[%s3176_s4 + $0xcf8] sm:$0xff]  ;;  %v804_v53 = vld [vmem:[%s3176_s4 + $0x12c8] sm:$0xff]  ;;  %v2371_v54 = vpack.c.bf16 %v605_v48, %v599_v47  ;;  %v851_v47 = vld [vmem:[%s3176_s4 + $0x1440] sm:$0xff] }
 0x19c   : > { %v857_v48 = vld [vmem:[%s3176_s4 + $0x1470] sm:$0xff] }
 0x1a1   : > { %2144 = vmatpush1.bf16.xpose.msra.mxu0 %v2143_v3  ;;  %v2163_v3 = vpack.c.bf16 %v369_v60, %v363_v59  ;;  %v617_v59 = vld [vmem:[%s3176_s4 + $0xcf0] sm:$0xff]  ;;  %v803_v60 = vld [vmem:[%s3176_s4 + $0x12c0] sm:$0xff] }
 0x1a2   : > { %2336 = vmatpush1.bf16.xpose.msra.mxu1 %v2335_v4  ;;  %2146 = vmatprep.subr.bf16.mxu0 %v2145_v5  ;;  %v2355_v4 = vpack.c.bf16 %v561_v62, %v555_v61  ;;  %v2165_v5 = vpack.c.bf16 %v382_v0, %v376_v63  ;;  %v809_v61 = vld [vmem:[%s3176_s4 + $0x12f0] sm:$0xff]  ;;  %v624_v62 = vld [vmem:[%s3176_s4 + $0xd28] sm:$0xff]  ;;  %v822_v0 = vld [vmem:[%s3176_s4 + $0x1358] sm:$0xff] }
 0x1a3   : > { %2338 = vmatprep.subr.bf16.mxu1 %v2337_v6  ;;  %v2357_v6 = vpack.c.bf16 %v574_v2, %v568_v1  ;;  %v816_v63 = vld [vmem:[%s3176_s4 + $0x1328] sm:$0xff]  ;;  %v2567_v2 = vpack.c.bf16 %v809_v61, %v803_v60  ;;  %v690_v61 = vld [vmem:[%s3176_s4 + $0xf38] sm:$0xff] }
 0x1a4   : > { %v684_v60 = vld [vmem:[%s3176_s4 + $0xf08] sm:$0xff] }
 0x1a9   : > { %2148 = vmatpush1.bf16.xpose.msra.mxu0 %v2147_v17  ;;  %v2167_v17 = vpack.c.bf16 %v381_v8, %v375_v7  ;;  %v815_v7 = vld [vmem:[%s3176_s4 + $0x1320] sm:$0xff]  ;;  %v821_v8 = vld [vmem:[%s3176_s4 + $0x1350] sm:$0xff] }
 0x1aa   : > { %2340 = vmatpush1.bf16.xpose.msra.mxu1 %v2339_v18  ;;  %2150 = vmatprep.subr.bf16.mxu0 %v2149_v19  ;;  %v2359_v18 = vpack.c.bf16 %v573_v10, %v567_v9  ;;  %v2169_v19 = vpack.c.bf16 %v394_v12, %v388_v11  ;;  %v636_v9 = vld [vmem:[%s3176_s4 + $0xd88] sm:$0xff]  ;;  %v642_v10 = vld [vmem:[%s3176_s4 + $0xdb8] sm:$0xff] }
 0x1ab   : > { %2342 = vmatprep.subr.bf16.mxu1 %v2341_v21  ;;  %v2361_v21 = vpack.c.bf16 %v586_v16, %v580_v13  ;;  %v828_v11 = vld [vmem:[%s3176_s4 + $0x1388] sm:$0xff]  ;;  %v834_v12 = vld [vmem:[%s3176_s4 + $0x13b8] sm:$0xff]  ;;  %v2571_v16 = vpack.c.bf16 %v821_v8, %v815_v7 }
 0x1ac   : > { %v696_v7 = vld [vmem:[%s3176_s4 + $0xf68] sm:$0xff]  ;;  %v702_v8 = vld [vmem:[%s3176_s4 + $0xf98] sm:$0xff] }
 0x1b1   : > { %2152 = vmatpush1.bf16.xpose.msra.mxu0 %v2151_v32  ;;  %v2171_v32 = vpack.c.bf16 %v393_v23, %v387_v22  ;;  %v827_v22 = vld [vmem:[%s3176_s4 + $0x1380] sm:$0xff]  ;;  %v833_v23 = vld [vmem:[%s3176_s4 + $0x13b0] sm:$0xff] }
 0x1b2   : > { %2344 = vmatpush1.bf16.xpose.msra.mxu1 %v2343_v33  ;;  %2154 = vmatprep.subr.bf16.mxu0 %v2153_v14  ;;  %v2363_v33 = vpack.c.bf16 %v585_v26, %v579_v24  ;;  %v2365_v14 = vpack.c.bf16 %v594_v28, %v588_v27  ;;  %v648_v24 = vld [vmem:[%s3176_s4 + $0xde8] sm:$0xff]  ;;  %v654_v26 = vld [vmem:[%s3176_s4 + $0xe18] sm:$0xff] }
 0x1b3   : > { %2346 = vmatprep.subr.bf16.mxu1 %v2345_v34  ;;  %v2557_v34 = vpack.c.bf16 %v786_v30, %v780_v29  ;;  %v840_v27 = vld [vmem:[%s3176_s4 + $0x13e8] sm:$0xff]  ;;  %v846_v28 = vld [vmem:[%s3176_s4 + $0x1418] sm:$0xff]  ;;  %v2575_v30 = vpack.c.bf16 %v833_v23, %v827_v22 }
 0x1b4   : > { %v708_v22 = vld [vmem:[%s3176_s4 + $0xfc8] sm:$0xff]  ;;  %v714_v23 = vld [vmem:[%s3176_s4 + $0xff8] sm:$0xff] }
 0x1b9   : > { %2156 = vmatpush1.bf16.xpose.msra.mxu0 %v2155_v20  ;;  %v2367_v20 = vpack.c.bf16 %v593_v37, %v587_v36  ;;  %v839_v36 = vld [vmem:[%s3176_s4 + $0x13e0] sm:$0xff]  ;;  %v845_v37 = vld [vmem:[%s3176_s4 + $0x1410] sm:$0xff] }
 0x1ba   : > { %2348 = vmatpush1.bf16.xpose.msra.mxu1 %v2347_v44  ;;  %2158 = vmatprep.subr.bf16.mxu0 %v2157_v45  ;;  %v2559_v44 = vpack.c.bf16 %v785_v39, %v779_v38  ;;  %v2369_v45 = vpack.c.bf16 %v606_v41, %v600_v40  ;;  %v660_v38 = vld [vmem:[%s3176_s4 + $0xe48] sm:$0xff]  ;;  %v666_v39 = vld [vmem:[%s3176_s4 + $0xe78] sm:$0xff] }
 0x1bb   : > { %2350 = vmatprep.subr.bf16.mxu1 %v2349_v46  ;;  %v2561_v46 = vpack.c.bf16 %v798_v43, %v792_v42  ;;  %v852_v40 = vld [vmem:[%s3176_s4 + $0x1448] sm:$0xff]  ;;  %v858_v41 = vld [vmem:[%s3176_s4 + $0x1478] sm:$0xff]  ;;  %v2579_v43 = vpack.c.bf16 %v845_v37, %v839_v36 }
 0x1bc   : > { %v720_v36 = vld [vmem:[%s3176_s4 + $0x1028] sm:$0xff]  ;;  %v726_v37 = vld [vmem:[%s3176_s4 + $0x1058] sm:$0xff] }
 0x1c1   : > { %2160 = vmatpush1.bf16.xpose.msra.mxu0 %v2159_v55  ;;  %v2563_v55 = vpack.c.bf16 %v797_v50, %v791_v49  ;;  %v672_v49 = vld [vmem:[%s3176_s4 + $0xea8] sm:$0xff]  ;;  %v678_v50 = vld [vmem:[%s3176_s4 + $0xed8] sm:$0xff] }
 0x1c2   : > { %2352 = vmatpush1.bf16.xpose.msra.mxu1 %v2351_v56  ;;  %2162 = vmatprep.subr.bf16.mxu0 %v2161_v57  ;;  %v2373_v56 = vpack.c.bf16 %v618_v52, %v612_v51  ;;  %v864_v51 = vld [vmem:[%s3176_s4 + $0x14a8] sm:$0xff]  ;;  %v870_v52 = vld [vmem:[%s3176_s4 + $0x14d8] sm:$0xff] }
 0x1c3   : > { %2354 = vmatprep.subr.bf16.mxu1 %v2353_v58  ;;  %v611_v58 = vld [vmem:[%s3176_s4 + $0xcc0] sm:$0xff] }
 0x1c4   : > { %v2375_v1 = vpack.c.bf16 %v617_v59, %v611_v58  ;;  %v863_v58 = vld [vmem:[%s3176_s4 + $0x14a0] sm:$0xff]  ;;  %v869_v59 = vld [vmem:[%s3176_s4 + $0x14d0] sm:$0xff] }
 0x1c9   : > { %2164 = vmatpush1.bf16.xpose.msra.mxu0 %v2163_v3 }
 0x1ca   : > { %2356 = vmatpush1.bf16.xpose.msra.mxu1 %v2355_v4  ;;  %2166 = vmatprep.subr.bf16.mxu0 %v2165_v5  ;;  %v2569_v4 = vpack.c.bf16 %v822_v0, %v816_v63  ;;  %v623_v5 = vld [vmem:[%s3176_s4 + $0xd20] sm:$0xff]  ;;  %v2587_v0 = vpack.c.bf16 %v869_v59, %v863_v58  ;;  %v744_v58 = vld [vmem:[%s3176_s4 + $0x10e8] sm:$0xff]  ;;  %v750_v59 = vld [vmem:[%s3176_s4 + $0x1118] sm:$0xff] }
 0x1cb   : > { %2358 = vmatprep.subr.bf16.mxu1 %v2357_v6  ;;  %v629_v6 = vld [vmem:[%s3176_s4 + $0xd50] sm:$0xff] }
 0x1cc   : > { %v2379_v13 = vpack.c.bf16 %v629_v6, %v623_v5  ;;  %v875_v5 = vld [vmem:[%s3176_s4 + $0x1500] sm:$0xff]  ;;  %v881_v6 = vld [vmem:[%s3176_s4 + $0x1530] sm:$0xff] }
 0x1d1   : > { %2168 = vmatpush1.bf16.xpose.msra.mxu0 %v2167_v17  ;;  %v2381_v17 = vpack.c.bf16 %v642_v10, %v636_v9  ;;  %v888_v9 = vld [vmem:[%s3176_s4 + $0x1568] sm:$0xff]  ;;  %v894_v10 = vld [vmem:[%s3176_s4 + $0x1598] sm:$0xff] }
 0x1d2   : > { %2360 = vmatpush1.bf16.xpose.msra.mxu1 %v2359_v18  ;;  %2170 = vmatprep.subr.bf16.mxu0 %v2169_v19  ;;  %v2573_v18 = vpack.c.bf16 %v834_v12, %v828_v11  ;;  %v635_v19 = vld [vmem:[%s3176_s4 + $0xd80] sm:$0xff]  ;;  %v2591_v12 = vpack.c.bf16 %v881_v6, %v875_v5  ;;  %v756_v5 = vld [vmem:[%s3176_s4 + $0x1148] sm:$0xff]  ;;  %v762_v6 = vld [vmem:[%s3176_s4 + $0x1178] sm:$0xff] }
 0x1d3   : > { %2362 = vmatprep.subr.bf16.mxu1 %v2361_v21  ;;  %v641_v21 = vld [vmem:[%s3176_s4 + $0xdb0] sm:$0xff] }
 0x1d4   : > { %v2383_v29 = vpack.c.bf16 %v641_v21, %v635_v19  ;;  %v887_v19 = vld [vmem:[%s3176_s4 + $0x1560] sm:$0xff]  ;;  %v893_v21 = vld [vmem:[%s3176_s4 + $0x1590] sm:$0xff] }
 0x1d9   : > { %2172 = vmatpush1.bf16.xpose.msra.mxu0 %v2171_v32  ;;  %v2385_v32 = vpack.c.bf16 %v654_v26, %v648_v24  ;;  %v900_v24 = vld [vmem:[%s3176_s4 + $0x15c8] sm:$0xff]  ;;  %v906_v26 = vld [vmem:[%s3176_s4 + $0x15f8] sm:$0xff] }
 0x1da   : > { %2364 = vmatpush1.bf16.xpose.msra.mxu1 %v2363_v33  ;;  %2366 = vmatprep.subr.bf16.mxu0 %v2365_v14  ;;  %v2577_v33 = vpack.c.bf16 %v846_v28, %v840_v27  ;;  %v647_v14 = vld [vmem:[%s3176_s4 + $0xde0] sm:$0xff]  ;;  %v2595_v28 = vpack.c.bf16 %v893_v21, %v887_v19  ;;  %v768_v19 = vld [vmem:[%s3176_s4 + $0x11a8] sm:$0xff]  ;;  %v774_v21 = vld [vmem:[%s3176_s4 + $0x11d8] sm:$0xff] }
 0x1db   : > { %2558 = vmatprep.subr.bf16.mxu1 %v2557_v34  ;;  %v653_v34 = vld [vmem:[%s3176_s4 + $0xe10] sm:$0xff] }
 0x1dc   : > { %v2387_v42 = vpack.c.bf16 %v653_v34, %v647_v14  ;;  %v899_v14 = vld [vmem:[%s3176_s4 + $0x15c0] sm:$0xff]  ;;  %v905_v34 = vld [vmem:[%s3176_s4 + $0x15f0] sm:$0xff] }
 0x1e0   : > { %1187 = vmatmul.mubr.f32.vlgmr.msra.gmra.mrb[0].mxu0 %v3468_v31 }
 0x1e1   : > { %1400 = vmatmul.mubr.f32.vlgmr.msra.gmra.mrb[0].mxu1 %v3468_v31  ;;  %2368 = vmatpush1.bf16.xpose.msra.mxu0 %v2367_v20  ;;  %v810_v31 = vld [vmem:[%s3176_s4 + $0x12f8] sm:$0xff]  ;;  %v2389_v20 = vpack.c.bf16 %v666_v39, %v660_v38  ;;  %v912_v38 = vld [vmem:[%s3176_s4 + $0x1628] sm:$0xff] }
 0x1e2   : > { %2560 = vmatpush1.bf16.xpose.msra.mxu1 %v2559_v44  ;;  %2370 = vmatprep.subr.bf16.mxu0 %v2369_v45  ;;  %v2565_v57 = vpack.c.bf16 %v810_v31, %v804_v53  ;;  %v2581_v44 = vpack.c.bf16 %v858_v41, %v852_v40  ;;  %v659_v45 = vld [vmem:[%s3176_s4 + $0xe40] sm:$0xff]  ;;  %v2583_v31 = vpack.c.bf16 %v857_v48, %v851_v47  ;;  %v918_v39 = vld [vmem:[%s3176_s4 + $0x1658] sm:$0xff]  ;;  %v732_v47 = vld [vmem:[%s3176_s4 + $0x1088] sm:$0xff] }
 0x1e3   : > { %2562 = vmatprep.subr.bf16.mxu1 %v2561_v46  ;;  %1470 = vmatprep.mubr.f32.mxu0 %v3238_v15  ;;  %v665_v46 = vld [vmem:[%s3176_s4 + $0xe70] sm:$0xff]  ;;  %v2599_v41 = vpack.c.bf16 %v905_v34, %v899_v14  ;;  %v738_v48 = vld [vmem:[%s3176_s4 + $0x10b8] sm:$0xff]  ;;  %v596_v34 = vld [vmem:[%s3176_s4 + $0xc48] sm:$0xff] }
 0x1e4   : > { %1683 = vmatprep.mubr.f32.mxu1 %v3238_v15  ;;  %v630_v15 = vld [vmem:[%s3176_s4 + $0xd58] sm:$0xff]  ;;  %v2391_v53 = vpack.c.bf16 %v665_v46, %v659_v45  ;;  %v911_v45 = vld [vmem:[%s3176_s4 + $0x1620] sm:$0xff]  ;;  %v917_v46 = vld [vmem:[%s3176_s4 + $0x1650] sm:$0xff] }
 0x1e5   : > { %v2377_v3 = vpack.c.bf16 %v630_v15, %v624_v62  ;;  %v876_v62 = vld [vmem:[%s3176_s4 + $0x1508] sm:$0xff]  ;;  %v882_v15 = vld [vmem:[%s3176_s4 + $0x1538] sm:$0xff] }
 0x1e6   : > { %v590_v14 = vld [vmem:[%s3176_s4 + $0xc18] sm:$0xff] }
 0x1e9   : > { %2372 = vmatpush1.bf16.xpose.msra.mxu0 %v2371_v54  ;;  %v2393_v54 = vpack.c.bf16 %v678_v50, %v672_v49  ;;  %v924_v49 = vld [vmem:[%s3176_s4 + $0x1688] sm:$0xff]  ;;  %v930_v50 = vld [vmem:[%s3176_s4 + $0x16b8] sm:$0xff] }
 0x1ea   : > { %2564 = vmatpush1.bf16.xpose.msra.mxu1 %v2563_v55  ;;  %2374 = vmatprep.subr.bf16.mxu0 %v2373_v56  ;;  %v2585_v55 = vpack.c.bf16 %v870_v52, %v864_v51  ;;  %v671_v56 = vld [vmem:[%s3176_s4 + $0xea0] sm:$0xff]  ;;  %v2603_v52 = vpack.c.bf16 %v917_v46, %v911_v45  ;;  %v602_v45 = vld [vmem:[%s3176_s4 + $0xc78] sm:$0xff]  ;;  %v608_v46 = vld [vmem:[%s3176_s4 + $0xca8] sm:$0xff] }
 0x1eb   : > { %2566 = vmatprep.subr.bf16.mxu1 %v2565_v57  ;;  %v677_v57 = vld [vmem:[%s3176_s4 + $0xed0] sm:$0xff] }
 0x1ec   : > { %v2395_v63 = vpack.c.bf16 %v677_v57, %v671_v56  ;;  %v923_v56 = vld [vmem:[%s3176_s4 + $0x1680] sm:$0xff]  ;;  %v929_v57 = vld [vmem:[%s3176_s4 + $0x16b0] sm:$0xff] }
 0x1f1   : > { %2376 = vmatpush1.bf16.xpose.msra.mxu0 %v2375_v1  ;;  %v2397_v1 = vpack.c.bf16 %v690_v61, %v684_v60  ;;  %v936_v60 = vld [vmem:[%s3176_s4 + $0x16e8] sm:$0xff]  ;;  %v942_v61 = vld [vmem:[%s3176_s4 + $0x1718] sm:$0xff] }
 0x1f2   : > { %2568 = vmatpush1.bf16.xpose.msra.mxu1 %v2567_v2  ;;  %2378 = vmatprep.subr.bf16.mxu0 %v2377_v3  ;;  %v2589_v2 = vpack.c.bf16 %v882_v15, %v876_v62  ;;  %v683_v3 = vld [vmem:[%s3176_s4 + $0xf00] sm:$0xff]  ;;  %v2607_v15 = vpack.c.bf16 %v929_v57, %v923_v56  ;;  %v614_v57 = vld [vmem:[%s3176_s4 + $0xcd8] sm:$0xff] }
 0x1f3   : > { %2570 = vmatprep.subr.bf16.mxu1 %v2569_v4  ;;  %v689_v4 = vld [vmem:[%s3176_s4 + $0xf30] sm:$0xff]  ;;  %v799_v56 = vld [vmem:[%s3176_s4 + $0x12a0] sm:$0xff] }
 0x1f4   : > { %v2399_v11 = vpack.c.bf16 %v689_v4, %v683_v3  ;;  %v935_v3 = vld [vmem:[%s3176_s4 + $0x16e0] sm:$0xff]  ;;  %v941_v4 = vld [vmem:[%s3176_s4 + $0x1710] sm:$0xff] }
 0x1f9   : > { %2380 = vmatpush1.bf16.xpose.msra.mxu0 %v2379_v13  ;;  %v2401_v13 = vpack.c.bf16 %v702_v8, %v696_v7  ;;  %v948_v7 = vld [vmem:[%s3176_s4 + $0x1748] sm:$0xff]  ;;  %v954_v8 = vld [vmem:[%s3176_s4 + $0x1778] sm:$0xff] }
 0x1fa   : > { %2572 = vmatpush1.bf16.xpose.msra.mxu1 %v2571_v16  ;;  %2382 = vmatprep.subr.bf16.mxu0 %v2381_v17  ;;  %v2593_v16 = vpack.c.bf16 %v894_v10, %v888_v9  ;;  %v695_v17 = vld [vmem:[%s3176_s4 + $0xf60] sm:$0xff]  ;;  %v2611_v10 = vpack.c.bf16 %v941_v4, %v935_v3  ;;  %v626_v4 = vld [vmem:[%s3176_s4 + $0xd38] sm:$0xff] }
 0x1fb   : > { %2574 = vmatprep.subr.bf16.mxu1 %v2573_v18  ;;  %v701_v18 = vld [vmem:[%s3176_s4 + $0xf90] sm:$0xff]  ;;  %v811_v3 = vld [vmem:[%s3176_s4 + $0x1300] sm:$0xff] }
 0x1fc   : > { %v2403_v27 = vpack.c.bf16 %v701_v18, %v695_v17  ;;  %v947_v17 = vld [vmem:[%s3176_s4 + $0x1740] sm:$0xff]  ;;  %v953_v18 = vld [vmem:[%s3176_s4 + $0x1770] sm:$0xff] }
 0x201   : > { %2384 = vmatpush1.bf16.xpose.msra.mxu0 %v2383_v29  ;;  %v2405_v29 = vpack.c.bf16 %v714_v23, %v708_v22  ;;  %v960_v22 = vld [vmem:[%s3176_s4 + $0x17a8] sm:$0xff]  ;;  %v966_v23 = vld [vmem:[%s3176_s4 + $0x17d8] sm:$0xff] }
 0x202   : > { %2576 = vmatpush1.bf16.xpose.msra.mxu1 %v2575_v30  ;;  %2386 = vmatprep.subr.bf16.mxu0 %v2385_v32  ;;  %v2597_v30 = vpack.c.bf16 %v906_v26, %v900_v24  ;;  %v707_v32 = vld [vmem:[%s3176_s4 + $0xfc0] sm:$0xff]  ;;  %v2615_v26 = vpack.c.bf16 %v953_v18, %v947_v17  ;;  %v638_v17 = vld [vmem:[%s3176_s4 + $0xd98] sm:$0xff]  ;;  %v644_v18 = vld [vmem:[%s3176_s4 + $0xdc8] sm:$0xff] }
 0x203   : > { %2578 = vmatprep.subr.bf16.mxu1 %v2577_v33  ;;  %v713_v33 = vld [vmem:[%s3176_s4 + $0xff0] sm:$0xff] }
 0x204   : > { %v2407_v40 = vpack.c.bf16 %v713_v33, %v707_v32  ;;  %v959_v32 = vld [vmem:[%s3176_s4 + $0x17a0] sm:$0xff]  ;;  %v965_v33 = vld [vmem:[%s3176_s4 + $0x17d0] sm:$0xff] }
 0x209   : > { %2388 = vmatpush1.bf16.xpose.msra.mxu0 %v2387_v42  ;;  %v2409_v42 = vpack.c.bf16 %v726_v37, %v720_v36  ;;  %v782_v36 = vld [vmem:[%s3176_s4 + $0x1218] sm:$0xff]  ;;  %v788_v37 = vld [vmem:[%s3176_s4 + $0x1248] sm:$0xff] }
 0x20a   : > { %2580 = vmatpush1.bf16.xpose.msra.mxu1 %v2579_v43  ;;  %2390 = vmatprep.subr.bf16.mxu0 %v2389_v20  ;;  %v2601_v43 = vpack.c.bf16 %v918_v39, %v912_v38  ;;  %v719_v20 = vld [vmem:[%s3176_s4 + $0x1020] sm:$0xff]  ;;  %v2619_v39 = vpack.c.bf16 %v965_v33, %v959_v32  ;;  %v650_v32 = vld [vmem:[%s3176_s4 + $0xdf8] sm:$0xff]  ;;  %v656_v33 = vld [vmem:[%s3176_s4 + $0xe28] sm:$0xff] }
 0x20b   : > { %2582 = vmatprep.subr.bf16.mxu1 %v2581_v44  ;;  %v725_v44 = vld [vmem:[%s3176_s4 + $0x1050] sm:$0xff] }
 0x20c   : > { %v2411_v51 = vpack.c.bf16 %v725_v44, %v719_v20  ;;  %v781_v20 = vld [vmem:[%s3176_s4 + $0x1210] sm:$0xff]  ;;  %v787_v44 = vld [vmem:[%s3176_s4 + $0x1240] sm:$0xff] }
 0x211   : > { %2392 = vmatpush1.bf16.xpose.msra.mxu0 %v2391_v53  ;;  %v2413_v53 = vpack.c.bf16 %v738_v48, %v732_v47  ;;  %v794_v47 = vld [vmem:[%s3176_s4 + $0x1278] sm:$0xff]  ;;  %v800_v48 = vld [vmem:[%s3176_s4 + $0x12a8] sm:$0xff] }
 0x212   : > { %2584 = vmatpush1.bf16.xpose.msra.mxu1 %v2583_v31  ;;  %2394 = vmatprep.subr.bf16.mxu0 %v2393_v54  ;;  %v2605_v31 = vpack.c.bf16 %v930_v50, %v924_v49  ;;  %v731_v54 = vld [vmem:[%s3176_s4 + $0x1080] sm:$0xff]  ;;  %v2623_v50 = vpack.c.bf16 %v787_v44, %v781_v20  ;;  %v662_v20 = vld [vmem:[%s3176_s4 + $0xe58] sm:$0xff]  ;;  %v668_v44 = vld [vmem:[%s3176_s4 + $0xe88] sm:$0xff] }
 0x213   : > { %2586 = vmatprep.subr.bf16.mxu1 %v2585_v55  ;;  %v737_v55 = vld [vmem:[%s3176_s4 + $0x10b0] sm:$0xff] }
 0x214   : > { %v2415_v62 = vpack.c.bf16 %v737_v55, %v731_v54  ;;  %v607_v54 = vld [vmem:[%s3176_s4 + $0xca0] sm:$0xff]  ;;  %v793_v55 = vld [vmem:[%s3176_s4 + $0x1270] sm:$0xff] }
 0x219   : > { %2396 = vmatpush1.bf16.xpose.msra.mxu0 %v2395_v63  ;;  %v2417_v63 = vpack.c.bf16 %v750_v59, %v744_v58  ;;  %v620_v58 = vld [vmem:[%s3176_s4 + $0xd08] sm:$0xff]  ;;  %v806_v59 = vld [vmem:[%s3176_s4 + $0x12d8] sm:$0xff] }
 0x21a   : > { %2588 = vmatpush1.bf16.xpose.msra.mxu1 %v2587_v0  ;;  %2398 = vmatprep.subr.bf16.mxu0 %v2397_v1  ;;  %v2609_v0 = vpack.c.bf16 %v942_v61, %v936_v60  ;;  %v743_v1 = vld [vmem:[%s3176_s4 + $0x10e0] sm:$0xff]  ;;  %v812_v60 = vld [vmem:[%s3176_s4 + $0x1308] sm:$0xff] }
 0x21b   : > { %2590 = vmatprep.subr.bf16.mxu1 %v2589_v2  ;;  %v749_v2 = vld [vmem:[%s3176_s4 + $0x1110] sm:$0xff] }
 0x21c   : > { %v2419_v9 = vpack.c.bf16 %v749_v2, %v743_v1  ;;  %v619_v1 = vld [vmem:[%s3176_s4 + $0xd00] sm:$0xff]  ;;  %v805_v2 = vld [vmem:[%s3176_s4 + $0x12d0] sm:$0xff] }
 0x221   : > { %2400 = vmatpush1.bf16.xpose.msra.mxu0 %v2399_v11  ;;  %v2421_v11 = vpack.c.bf16 %v762_v6, %v756_v5  ;;  %v818_v5 = vld [vmem:[%s3176_s4 + $0x1338] sm:$0xff]  ;;  %v824_v6 = vld [vmem:[%s3176_s4 + $0x1368] sm:$0xff] }
 0x222   : > { %2592 = vmatpush1.bf16.xpose.msra.mxu1 %v2591_v12  ;;  %2402 = vmatprep.subr.bf16.mxu0 %v2401_v13  ;;  %v2613_v12 = vpack.c.bf16 %v954_v8, %v948_v7  ;;  %v755_v13 = vld [vmem:[%s3176_s4 + $0x1140] sm:$0xff]  ;;  %v2631_v8 = vpack.c.bf16 %v811_v3, %v805_v2  ;;  %v692_v2 = vld [vmem:[%s3176_s4 + $0xf48] sm:$0xff]  ;;  %v878_v3 = vld [vmem:[%s3176_s4 + $0x1518] sm:$0xff] }
 0x223   : > { %2594 = vmatprep.subr.bf16.mxu1 %v2593_v16  ;;  %v761_v16 = vld [vmem:[%s3176_s4 + $0x1170] sm:$0xff] }
 0x224   : > { %v2423_v24 = vpack.c.bf16 %v761_v16, %v755_v13  ;;  %v817_v13 = vld [vmem:[%s3176_s4 + $0x1330] sm:$0xff]  ;;  %v823_v16 = vld [vmem:[%s3176_s4 + $0x1360] sm:$0xff] }
 0x229   : > { %2404 = vmatpush1.bf16.xpose.msra.mxu0 %v2403_v27  ;;  %v2425_v27 = vpack.c.bf16 %v774_v21, %v768_v19  ;;  %v830_v19 = vld [vmem:[%s3176_s4 + $0x1398] sm:$0xff]  ;;  %v836_v21 = vld [vmem:[%s3176_s4 + $0x13c8] sm:$0xff] }
 0x22a   : > { %2596 = vmatpush1.bf16.xpose.msra.mxu1 %v2595_v28  ;;  %2406 = vmatprep.subr.bf16.mxu0 %v2405_v29  ;;  %v2617_v28 = vpack.c.bf16 %v966_v23, %v960_v22  ;;  %v767_v29 = vld [vmem:[%s3176_s4 + $0x11a0] sm:$0xff]  ;;  %v2635_v23 = vpack.c.bf16 %v823_v16, %v817_v13  ;;  %v704_v13 = vld [vmem:[%s3176_s4 + $0xfa8] sm:$0xff]  ;;  %v890_v16 = vld [vmem:[%s3176_s4 + $0x1578] sm:$0xff] }
 0x22b   : > { %2598 = vmatprep.subr.bf16.mxu1 %v2597_v30  ;;  %v773_v30 = vld [vmem:[%s3176_s4 + $0x11d0] sm:$0xff] }
 0x22c   : > { %v2427_v38 = vpack.c.bf16 %v773_v30, %v767_v29  ;;  %v829_v29 = vld [vmem:[%s3176_s4 + $0x1390] sm:$0xff]  ;;  %v835_v30 = vld [vmem:[%s3176_s4 + $0x13c0] sm:$0xff] }
 0x231   : > { %2408 = vmatpush1.bf16.xpose.msra.mxu0 %v2407_v40  ;;  %v2429_v40 = vpack.c.bf16 %v596_v34, %v590_v14  ;;  %v842_v14 = vld [vmem:[%s3176_s4 + $0x13f8] sm:$0xff]  ;;  %v848_v34 = vld [vmem:[%s3176_s4 + $0x1428] sm:$0xff] }
 0x232   : > { %2600 = vmatpush1.bf16.xpose.msra.mxu1 %v2599_v41  ;;  %2410 = vmatprep.subr.bf16.mxu0 %v2409_v42  ;;  %v2621_v41 = vpack.c.bf16 %v788_v37, %v782_v36  ;;  %v589_v42 = vld [vmem:[%s3176_s4 + $0xc10] sm:$0xff]  ;;  %v2639_v37 = vpack.c.bf16 %v835_v30, %v829_v29  ;;  %v716_v29 = vld [vmem:[%s3176_s4 + $0x1008] sm:$0xff]  ;;  %v902_v30 = vld [vmem:[%s3176_s4 + $0x15d8] sm:$0xff] }
 0x233   : > { %2602 = vmatprep.subr.bf16.mxu1 %v2601_v43  ;;  %v595_v43 = vld [vmem:[%s3176_s4 + $0xc40] sm:$0xff] }
 0x234   : > { %v2431_v49 = vpack.c.bf16 %v595_v43, %v589_v42  ;;  %v841_v42 = vld [vmem:[%s3176_s4 + $0x13f0] sm:$0xff]  ;;  %v847_v43 = vld [vmem:[%s3176_s4 + $0x1420] sm:$0xff] }
 0x239   : > { %2412 = vmatpush1.bf16.xpose.msra.mxu0 %v2411_v51  ;;  %v2433_v51 = vpack.c.bf16 %v608_v46, %v602_v45  ;;  %v854_v45 = vld [vmem:[%s3176_s4 + $0x1458] sm:$0xff]  ;;  %v860_v46 = vld [vmem:[%s3176_s4 + $0x1488] sm:$0xff] }
 0x23a   : > { %2604 = vmatpush1.bf16.xpose.msra.mxu1 %v2603_v52  ;;  %2414 = vmatprep.subr.bf16.mxu0 %v2413_v53  ;;  %v2625_v52 = vpack.c.bf16 %v800_v48, %v794_v47  ;;  %v2846_v53 = vld [vmem:[#allocation2] sm:$0xff]  ;;  %v2643_v48 = vpack.c.bf16 %v847_v43, %v841_v42  ;;  %v914_v43 = vld [vmem:[%s3176_s4 + $0x1638] sm:$0xff] }
 0x23b   : > { %2606 = vmatprep.subr.bf16.mxu1 %v2605_v31  ;;  %v601_v31 = vld [vmem:[%s3176_s4 + $0xc70] sm:$0xff]  ;;  %v728_v42 = vld [vmem:[%s3176_s4 + $0x1068] sm:$0xff] }
 0x23c   : > { %v2435_v61 = vpack.c.bf16 %v607_v54, %v601_v31  ;;  %v859_v31 = vld [vmem:[%s3176_s4 + $0x1480] sm:$0xff]  ;;  %v674_v54 = vld [vmem:[%s3176_s4 + $0xeb8] sm:$0xff] }
 0x241   : > { %2416 = vmatpush1.bf16.xpose.msra.mxu0 %v2415_v62  ;;  %v2627_v62 = vpack.c.bf16 %v799_v56, %v793_v55  ;;  %v680_v55 = vld [vmem:[%s3176_s4 + $0xee8] sm:$0xff]  ;;  %v866_v56 = vld [vmem:[%s3176_s4 + $0x14b8] sm:$0xff] }
 0x242   : > { %2608 = vmatpush1.bf16.xpose.msra.mxu1 %v2607_v15  ;;  %2418 = vmatprep.subr.bf16.mxu0 %v2417_v63  ;;  %v2437_v15 = vpack.c.bf16 %v620_v58, %v614_v57  ;;  %v2629_v63 = vpack.c.bf16 %v812_v60, %v806_v59  ;;  %v872_v57 = vld [vmem:[%s3176_s4 + $0x14e8] sm:$0xff]  ;;  %v2457_v60 = vpack.c.bf16 %v680_v55, %v674_v54 }
 0x243   : > { %2610 = vmatprep.subr.bf16.mxu1 %v2609_v0  ;;  %v613_v0 = vld [vmem:[%s3176_s4 + $0xcd0] sm:$0xff] }
 0x244   : > { %v2439_v7 = vpack.c.bf16 %v619_v1, %v613_v0  ;;  %v871_v0 = vld [vmem:[%s3176_s4 + $0x14e0] sm:$0xff]  ;;  %v686_v1 = vld [vmem:[%s3176_s4 + $0xf18] sm:$0xff] }
 0x249   : > { %2420 = vmatpush1.bf16.xpose.msra.mxu0 %v2419_v9 }
 0x24a   : > { %2612 = vmatpush1.bf16.xpose.msra.mxu1 %v2611_v10  ;;  %2422 = vmatprep.subr.bf16.mxu0 %v2421_v11  ;;  %v2633_v10 = vpack.c.bf16 %v824_v6, %v818_v5  ;;  %v625_v11 = vld [vmem:[%s3176_s4 + $0xd30] sm:$0xff]  ;;  %v2461_v6 = vpack.c.bf16 %v692_v2, %v686_v1  ;;  %v739_v1 = vld [vmem:[%s3176_s4 + $0x10c0] sm:$0xff] }
 0x24b   : > { %2614 = vmatprep.subr.bf16.mxu1 %v2613_v12  ;;  %v631_v12 = vld [vmem:[%s3176_s4 + $0xd60] sm:$0xff]  ;;  %v925_v2 = vld [vmem:[%s3176_s4 + $0x1690] sm:$0xff] }
 0x24c   : > { %v2443_v22 = vpack.c.bf16 %v631_v12, %v625_v11  ;;  %v883_v11 = vld [vmem:[%s3176_s4 + $0x1540] sm:$0xff]  ;;  %v698_v12 = vld [vmem:[%s3176_s4 + $0xf78] sm:$0xff] }
 0x251   : > { %2424 = vmatpush1.bf16.xpose.msra.mxu0 %v2423_v24  ;;  %v2445_v24 = vpack.c.bf16 %v644_v18, %v638_v17  ;;  %v896_v17 = vld [vmem:[%s3176_s4 + $0x15a8] sm:$0xff] }
 0x252   : > { %2616 = vmatpush1.bf16.xpose.msra.mxu1 %v2615_v26  ;;  %2426 = vmatprep.subr.bf16.mxu0 %v2425_v27  ;;  %v2637_v26 = vpack.c.bf16 %v836_v21, %v830_v19  ;;  %v637_v27 = vld [vmem:[%s3176_s4 + $0xd90] sm:$0xff]  ;;  %v2465_v21 = vpack.c.bf16 %v704_v13, %v698_v12  ;;  %v751_v12 = vld [vmem:[%s3176_s4 + $0x1120] sm:$0xff] }
 0x253   : > { %2618 = vmatprep.subr.bf16.mxu1 %v2617_v28  ;;  %v643_v28 = vld [vmem:[%s3176_s4 + $0xdc0] sm:$0xff]  ;;  %v937_v13 = vld [vmem:[%s3176_s4 + $0x16f0] sm:$0xff] }
 0x254   : > { %v2447_v36 = vpack.c.bf16 %v643_v28, %v637_v27  ;;  %v895_v27 = vld [vmem:[%s3176_s4 + $0x15a0] sm:$0xff]  ;;  %v710_v28 = vld [vmem:[%s3176_s4 + $0xfd8] sm:$0xff] }
 0x259   : > { %2428 = vmatpush1.bf16.xpose.msra.mxu0 %v2427_v38  ;;  %v2449_v38 = vpack.c.bf16 %v656_v33, %v650_v32  ;;  %v908_v32 = vld [vmem:[%s3176_s4 + $0x1608] sm:$0xff] }
 0x25a   : > { %2620 = vmatpush1.bf16.xpose.msra.mxu1 %v2619_v39  ;;  %2430 = vmatprep.subr.bf16.mxu0 %v2429_v40  ;;  %v2641_v39 = vpack.c.bf16 %v848_v34, %v842_v14  ;;  %v649_v40 = vld [vmem:[%s3176_s4 + $0xdf0] sm:$0xff]  ;;  %v2469_v34 = vpack.c.bf16 %v716_v29, %v710_v28  ;;  %v763_v28 = vld [vmem:[%s3176_s4 + $0x1180] sm:$0xff] }
 0x25b   : > { %2622 = vmatprep.subr.bf16.mxu1 %v2621_v41  ;;  %v655_v41 = vld [vmem:[%s3176_s4 + $0xe20] sm:$0xff]  ;;  %v949_v29 = vld [vmem:[%s3176_s4 + $0x1750] sm:$0xff] }
 0x25c   : > { %v2451_v47 = vpack.c.bf16 %v655_v41, %v649_v40  ;;  %v907_v40 = vld [vmem:[%s3176_s4 + $0x1600] sm:$0xff]  ;;  %v722_v41 = vld [vmem:[%s3176_s4 + $0x1038] sm:$0xff] }
 0x260   : > { %1471 = vmatmul.mubr.f32.vlgmr.msra.gmra.mrb[2].mxu0 %v2846_v53 }
 0x261   : > { %2432 = vmatpush1.bf16.xpose.msra.mxu0 %v2431_v49  ;;  %1684 = vmatmul.mubr.f32.vlgmr.msra.gmra.mrb[2].mxu1 %v2846_v53  ;;  %v2453_v49 = vpack.c.bf16 %v668_v44, %v662_v20  ;;  %v853_v53 = vld [vmem:[%s3176_s4 + $0x1450] sm:$0xff]  ;;  %v920_v20 = vld [vmem:[%s3176_s4 + $0x1668] sm:$0xff] }
 0x262   : > { %2624 = vmatpush1.bf16.xpose.msra.mxu1 %v2623_v50  ;;  %2434 = vmatprep.subr.bf16.mxu0 %v2433_v51  ;;  %v2645_v50 = vpack.c.bf16 %v860_v46, %v854_v45  ;;  %v661_v51 = vld [vmem:[%s3176_s4 + $0xe50] sm:$0xff]  ;;  %v2647_v59 = vpack.c.bf16 %v859_v31, %v853_v53  ;;  %v2473_v46 = vpack.c.bf16 %v728_v42, %v722_v41  ;;  %v734_v53 = vld [vmem:[%s3176_s4 + $0x1098] sm:$0xff]  ;;  %v740_v31 = vld [vmem:[%s3176_s4 + $0x10c8] sm:$0xff] }
 0x263   : > { %2626 = vmatprep.subr.bf16.mxu1 %v2625_v52  ;;  %1541 = vmatprep.mubr.f32.mxu0 %v3334_v25  ;;  %v667_v52 = vld [vmem:[%s3176_s4 + $0xe80] sm:$0xff]  ;;  %v961_v42 = vld [vmem:[%s3176_s4 + $0x17b0] sm:$0xff] }
 0x264   : > { %1754 = vmatprep.mubr.f32.mxu1 %v3334_v25  ;;  %v632_v25 = vld [vmem:[%s3176_s4 + $0xd68] sm:$0xff]  ;;  %v2455_v58 = vpack.c.bf16 %v667_v52, %v661_v51  ;;  %v919_v52 = vld [vmem:[%s3176_s4 + $0x1660] sm:$0xff] }
 0x265   : > { %v2441_v9 = vpack.c.bf16 %v632_v25, %v626_v4  ;;  %v884_v4 = vld [vmem:[%s3176_s4 + $0x1548] sm:$0xff]  ;;  %v775_v41 = vld [vmem:[%s3176_s4 + $0x11e0] sm:$0xff] }
 0x269   : > { %2436 = vmatpush1.bf16.xpose.msra.mxu0 %v2435_v61  ;;  %v2649_v61 = vpack.c.bf16 %v872_v57, %v866_v56  ;;  %v926_v56 = vld [vmem:[%s3176_s4 + $0x1698] sm:$0xff]  ;;  %v932_v57 = vld [vmem:[%s3176_s4 + $0x16c8] sm:$0xff] }
 0x26a   : > { %2628 = vmatpush1.bf16.xpose.msra.mxu1 %v2627_v62  ;;  %2438 = vmatprep.subr.bf16.mxu0 %v2437_v15  ;;  %v673_v62 = vld [vmem:[%s3176_s4 + $0xeb0] sm:$0xff]  ;;  %v679_v15 = vld [vmem:[%s3176_s4 + $0xee0] sm:$0xff] }
 0x26b   : > { %2630 = vmatprep.subr.bf16.mxu1 %v2629_v63  ;;  %v865_v63 = vld [vmem:[%s3176_s4 + $0x14b0] sm:$0xff]  ;;  %v2459_v25 = vpack.c.bf16 %v679_v15, %v673_v62  ;;  %v2477_v15 = vpack.c.bf16 %v740_v31, %v734_v53  ;;  %v783_v53 = vld [vmem:[%s3176_s4 + $0x1220] sm:$0xff] }
 0x26c   : > { %v2651_v5 = vpack.c.bf16 %v871_v0, %v865_v63  ;;  %v2669_v63 = vpack.c.bf16 %v932_v57, %v926_v56  ;;  %v733_v0 = vld [vmem:[%s3176_s4 + $0x1090] sm:$0xff]  ;;  %v796_v56 = vld [vmem:[%s3176_s4 + $0x1288] sm:$0xff]  ;;  %v802_v57 = vld [vmem:[%s3176_s4 + $0x12b8] sm:$0xff] }
 0x26d   : > { %v789_v31 = vld [vmem:[%s3176_s4 + $0x1250] sm:$0xff] }
 0x271   : > { %2440 = vmatpush1.bf16.xpose.msra.mxu0 %v2439_v7  ;;  %v2653_v7 = vpack.c.bf16 %v884_v4, %v878_v3  ;;  %v931_v3 = vld [vmem:[%s3176_s4 + $0x16c0] sm:$0xff]  ;;  %v746_v4 = vld [vmem:[%s3176_s4 + $0x10f8] sm:$0xff] }
 0x272   : > { %2632 = vmatpush1.bf16.xpose.msra.mxu1 %v2631_v8  ;;  %2442 = vmatprep.subr.bf16.mxu0 %v2441_v9  ;;  %v685_v8 = vld [vmem:[%s3176_s4 + $0xf10] sm:$0xff]  ;;  %v691_v9 = vld [vmem:[%s3176_s4 + $0xf40] sm:$0xff] }
 0x273   : > { %2634 = vmatprep.subr.bf16.mxu1 %v2633_v10  ;;  %v877_v10 = vld [vmem:[%s3176_s4 + $0x1510] sm:$0xff]  ;;  %v2463_v18 = vpack.c.bf16 %v691_v9, %v685_v8  ;;  %v2671_v8 = vpack.c.bf16 %v931_v3, %v925_v2  ;;  %v616_v2 = vld [vmem:[%s3176_s4 + $0xce8] sm:$0xff]  ;;  %v622_v3 = vld [vmem:[%s3176_s4 + $0xd18] sm:$0xff] }
 0x274   : > { %v2655_v19 = vpack.c.bf16 %v883_v11, %v877_v10  ;;  %v745_v11 = vld [vmem:[%s3176_s4 + $0x10f0] sm:$0xff] }
 0x279   : > { %2444 = vmatpush1.bf16.xpose.msra.mxu0 %v2443_v22  ;;  %v2657_v22 = vpack.c.bf16 %v896_v17, %v890_v16  ;;  %v943_v16 = vld [vmem:[%s3176_s4 + $0x1720] sm:$0xff]  ;;  %v758_v17 = vld [vmem:[%s3176_s4 + $0x1158] sm:$0xff] }
 0x27a   : > { %2636 = vmatpush1.bf16.xpose.msra.mxu1 %v2635_v23  ;;  %2446 = vmatprep.subr.bf16.mxu0 %v2445_v24  ;;  %v697_v23 = vld [vmem:[%s3176_s4 + $0xf70] sm:$0xff]  ;;  %v703_v24 = vld [vmem:[%s3176_s4 + $0xfa0] sm:$0xff] }
 0x27b   : > { %2638 = vmatprep.subr.bf16.mxu1 %v2637_v26  ;;  %v889_v26 = vld [vmem:[%s3176_s4 + $0x1570] sm:$0xff]  ;;  %v2467_v33 = vpack.c.bf16 %v703_v24, %v697_v23  ;;  %v2675_v23 = vpack.c.bf16 %v943_v16, %v937_v13  ;;  %v628_v13 = vld [vmem:[%s3176_s4 + $0xd48] sm:$0xff] }
 0x27c   : > { %v2659_v14 = vpack.c.bf16 %v895_v27, %v889_v26  ;;  %v757_v27 = vld [vmem:[%s3176_s4 + $0x1150] sm:$0xff]  ;;  %v820_v16 = vld [vmem:[%s3176_s4 + $0x1348] sm:$0xff] }
 0x281   : > { %2448 = vmatpush1.bf16.xpose.msra.mxu0 %v2447_v36  ;;  %v2661_v36 = vpack.c.bf16 %v908_v32, %v902_v30  ;;  %v955_v30 = vld [vmem:[%s3176_s4 + $0x1780] sm:$0xff]  ;;  %v770_v32 = vld [vmem:[%s3176_s4 + $0x11b8] sm:$0xff] }
 0x282   : > { %2640 = vmatpush1.bf16.xpose.msra.mxu1 %v2639_v37  ;;  %2450 = vmatprep.subr.bf16.mxu0 %v2449_v38  ;;  %v709_v37 = vld [vmem:[%s3176_s4 + $0xfd0] sm:$0xff]  ;;  %v715_v38 = vld [vmem:[%s3176_s4 + $0x1000] sm:$0xff] }
 0x283   : > { %2642 = vmatprep.subr.bf16.mxu1 %v2641_v39  ;;  %v901_v39 = vld [vmem:[%s3176_s4 + $0x15d0] sm:$0xff]  ;;  %v2471_v44 = vpack.c.bf16 %v715_v38, %v709_v37  ;;  %v2679_v37 = vpack.c.bf16 %v955_v30, %v949_v29  ;;  %v646_v29 = vld [vmem:[%s3176_s4 + $0xdd8] sm:$0xff]  ;;  %v832_v30 = vld [vmem:[%s3176_s4 + $0x13a8] sm:$0xff] }
 0x284   : > { %v2663_v45 = vpack.c.bf16 %v907_v40, %v901_v39  ;;  %v769_v40 = vld [vmem:[%s3176_s4 + $0x11b0] sm:$0xff] }
 0x289   : > { %2452 = vmatpush1.bf16.xpose.msra.mxu0 %v2451_v47  ;;  %v2665_v47 = vpack.c.bf16 %v920_v20, %v914_v43  ;;  %v967_v43 = vld [vmem:[%s3176_s4 + $0x17e0] sm:$0xff]  ;;  %v592_v20 = vld [vmem:[%s3176_s4 + $0xc28] sm:$0xff] }
 0x28a   : > { %2644 = vmatpush1.bf16.xpose.msra.mxu1 %v2643_v48  ;;  %2454 = vmatprep.subr.bf16.mxu0 %v2453_v49  ;;  %v721_v48 = vld [vmem:[%s3176_s4 + $0x1030] sm:$0xff]  ;;  %v727_v49 = vld [vmem:[%s3176_s4 + $0x1060] sm:$0xff] }
 0x28b   : > { %2646 = vmatprep.subr.bf16.mxu1 %v2645_v50  ;;  %v913_v50 = vld [vmem:[%s3176_s4 + $0x1630] sm:$0xff] }
 0x28c   : > { %v2667_v62 = vpack.c.bf16 %v919_v52, %v913_v50  ;;  %v597_v52 = vld [vmem:[%s3176_s4 + $0xc50] sm:$0xff] }
 0x291   : > { %2456 = vmatpush1.bf16.xpose.msra.mxu0 %v2455_v58 }
 0x292   : > { %2648 = vmatpush1.bf16.xpose.msra.mxu1 %v2647_v59  ;;  %2458 = vmatprep.subr.bf16.mxu0 %v2457_v60  ;;  %v2475_v60 = vpack.c.bf16 %v727_v49, %v721_v48  ;;  %v2683_v48 = vpack.c.bf16 %v967_v43, %v961_v42  ;;  %v658_v42 = vld [vmem:[%s3176_s4 + $0xe38] sm:$0xff]  ;;  %v844_v43 = vld [vmem:[%s3176_s4 + $0x1408] sm:$0xff] }
 0x293   : > { %2650 = vmatprep.subr.bf16.mxu1 %v2649_v61 }
 0x299   : > { %2460 = vmatpush1.bf16.xpose.msra.mxu0 %v2459_v25  ;;  %v752_v25 = vld [vmem:[%s3176_s4 + $0x1128] sm:$0xff] }
 0x29a   : > { %2652 = vmatpush1.bf16.xpose.msra.mxu1 %v2651_v5  ;;  %2462 = vmatprep.subr.bf16.mxu0 %v2461_v6  ;;  %v938_v5 = vld [vmem:[%s3176_s4 + $0x16f8] sm:$0xff]  ;;  %v944_v6 = vld [vmem:[%s3176_s4 + $0x1728] sm:$0xff]  ;;  %v2481_v9 = vpack.c.bf16 %v752_v25, %v746_v4 }
 0x29b   : > { %2654 = vmatprep.subr.bf16.mxu1 %v2653_v7  ;;  %v2479_v7 = vpack.c.bf16 %v739_v1, %v733_v0  ;;  %v2673_v10 = vpack.c.bf16 %v944_v6, %v938_v5  ;;  %v795_v0 = vld [vmem:[%s3176_s4 + $0x1280] sm:$0xff]  ;;  %v801_v1 = vld [vmem:[%s3176_s4 + $0x12b0] sm:$0xff]  ;;  %v808_v4 = vld [vmem:[%s3176_s4 + $0x12e8] sm:$0xff] }
 0x29c   : > { %v814_v25 = vld [vmem:[%s3176_s4 + $0x1318] sm:$0xff]  ;;  %v2691_v6 = vpack.c.bf16 %v801_v1, %v795_v0  ;;  %v868_v0 = vld [vmem:[%s3176_s4 + $0x14c8] sm:$0xff] }
 0x29d   : > { %v874_v1 = vld [vmem:[%s3176_s4 + $0x14f8] sm:$0xff] }
 0x2a1   : > { %2464 = vmatpush1.bf16.xpose.msra.mxu0 %v2463_v18  ;;  %v764_v18 = vld [vmem:[%s3176_s4 + $0x1188] sm:$0xff] }
 0x2a2   : > { %2656 = vmatpush1.bf16.xpose.msra.mxu1 %v2655_v19  ;;  %2466 = vmatprep.subr.bf16.mxu0 %v2465_v21  ;;  %v950_v19 = vld [vmem:[%s3176_s4 + $0x1758] sm:$0xff]  ;;  %v956_v21 = vld [vmem:[%s3176_s4 + $0x1788] sm:$0xff]  ;;  %v2485_v24 = vpack.c.bf16 %v764_v18, %v758_v17 }
 0x2a3   : > { %2658 = vmatprep.subr.bf16.mxu1 %v2657_v22  ;;  %v2483_v22 = vpack.c.bf16 %v751_v12, %v745_v11  ;;  %v2677_v26 = vpack.c.bf16 %v956_v21, %v950_v19  ;;  %v807_v11 = vld [vmem:[%s3176_s4 + $0x12e0] sm:$0xff]  ;;  %v813_v12 = vld [vmem:[%s3176_s4 + $0x1310] sm:$0xff]  ;;  %v826_v17 = vld [vmem:[%s3176_s4 + $0x1378] sm:$0xff] }
 0x2a4   : > { %v2695_v19 = vpack.c.bf16 %v813_v12, %v807_v11  ;;  %v880_v11 = vld [vmem:[%s3176_s4 + $0x1528] sm:$0xff]  ;;  %v886_v12 = vld [vmem:[%s3176_s4 + $0x1558] sm:$0xff] }
 0x2a9   : > { %2468 = vmatpush1.bf16.xpose.msra.mxu0 %v2467_v33  ;;  %v776_v33 = vld [vmem:[%s3176_s4 + $0x11e8] sm:$0xff] }
 0x2aa   : > { %2660 = vmatpush1.bf16.xpose.msra.mxu1 %v2659_v14  ;;  %2470 = vmatprep.subr.bf16.mxu0 %v2469_v34  ;;  %v962_v14 = vld [vmem:[%s3176_s4 + $0x17b8] sm:$0xff]  ;;  %v968_v34 = vld [vmem:[%s3176_s4 + $0x17e8] sm:$0xff]  ;;  %v2489_v38 = vpack.c.bf16 %v776_v33, %v770_v32 }
 0x2ab   : > { %2662 = vmatprep.subr.bf16.mxu1 %v2661_v36  ;;  %v2487_v36 = vpack.c.bf16 %v763_v28, %v757_v27  ;;  %v2681_v39 = vpack.c.bf16 %v968_v34, %v962_v14  ;;  %v825_v27 = vld [vmem:[%s3176_s4 + $0x1370] sm:$0xff]  ;;  %v640_v28 = vld [vmem:[%s3176_s4 + $0xda8] sm:$0xff]  ;;  %v838_v32 = vld [vmem:[%s3176_s4 + $0x13d8] sm:$0xff] }
 0x2ac   : > { %v2509_v34 = vpack.c.bf16 %v646_v29, %v640_v28 }
 0x2b1   : > { %2472 = vmatpush1.bf16.xpose.msra.mxu0 %v2471_v44  ;;  %v598_v44 = vld [vmem:[%s3176_s4 + $0xc58] sm:$0xff] }
 0x2b2   : > { %2664 = vmatpush1.bf16.xpose.msra.mxu1 %v2663_v45  ;;  %2474 = vmatprep.subr.bf16.mxu0 %v2473_v46  ;;  %v784_v45 = vld [vmem:[%s3176_s4 + $0x1228] sm:$0xff]  ;;  %v790_v46 = vld [vmem:[%s3176_s4 + $0x1258] sm:$0xff]  ;;  %v2493_v49 = vpack.c.bf16 %v598_v44, %v592_v20 }
 0x2b3   : > { %v1188_v51 = vpop.f32.mrb[0].mxu0  ;;  %2666 = vmatprep.subr.bf16.mxu1 %v2665_v47  ;;  %v2491_v47 = vpack.c.bf16 %v775_v41, %v769_v40  ;;  %v2685_v50 = vpack.c.bf16 %v790_v46, %v784_v45  ;;  %v837_v40 = vld [vmem:[%s3176_s4 + $0x13d0] sm:$0xff]  ;;  %v652_v41 = vld [vmem:[%s3176_s4 + $0xe08] sm:$0xff]  ;;  %v850_v20 = vld [vmem:[%s3176_s4 + $0x1438] sm:$0xff] }
 0x2b4   : > { %v1401_v54 = vpop.f32.mrb[0].mxu1  ;;  %v1190_v55 = vpop.f32.mrb[1].mxu0  ;;  %v2513_v46 = vpack.c.bf16 %v658_v42, %v652_v41 }
 0x2b5   : > { %v1840_v58 = vcombine.low %v1188_v51, %v1190_v55  ;;  %v1403_v59 = vpop.f32.mrb[1].mxu1  ;;  %v591_v51 = vld [vmem:[%s3176_s4 + $0xc20] sm:$0xff]  ;;  %v610_v55 = vld [vmem:[%s3176_s4 + $0xcb8] sm:$0xff] }
 0x2b6   : > { %v1841_v61 = vcombine.low %v1401_v54, %v1403_v59  ;;  %v604_v54 = vld [vmem:[%s3176_s4 + $0xc88] sm:$0xff]  ;;  %v2687_v59 = vpack.c.bf16 %v789_v31, %v783_v53  ;;  %v670_v53 = vld [vmem:[%s3176_s4 + $0xe98] sm:$0xff] }
 0x2b7   : > { %1848 = vst [vmem:[%s3829_s20] sm:$0xff] %v1840_v58  ;;  %v2495_v58 = vpack.c.bf16 %v597_v52, %v591_v51  ;;  %v849_v51 = vld [vmem:[%s3176_s4 + $0x1430] sm:$0xff]  ;;  %v664_v52 = vld [vmem:[%s3176_s4 + $0xe68] sm:$0xff] }
 0x2b8   : > { %1849 = vst [vmem:[%s3829_s20 + $0x8] sm:$0xff] %v1841_v61  ;;  %v2689_v61 = vpack.c.bf16 %v802_v57, %v796_v56  ;;  %v856_v31 = vld [vmem:[%s3176_s4 + $0x1468] sm:$0xff]  ;;  %v2517_v57 = vpack.c.bf16 %v670_v53, %v664_v52 }
 0x2b9   : > { %2476 = vmatpush1.bf16.xpose.msra.mxu0 %v2475_v60  ;;  %v2497_v60 = vpack.c.bf16 %v610_v55, %v604_v54  ;;  %v862_v54 = vld [vmem:[%s3176_s4 + $0x1498] sm:$0xff] }
 0x2ba   : > { %2668 = vmatpush1.bf16.xpose.msra.mxu1 %v2667_v62  ;;  %2478 = vmatprep.subr.bf16.mxu0 %v2477_v15  ;;  %v2847_v62 = vld [vmem:[#allocation2 + $0x8] sm:$0xff]  ;;  %v603_v15 = vld [vmem:[%s3176_s4 + $0xc80] sm:$0xff] }
 0x2bb   : > { %2670 = vmatprep.subr.bf16.mxu1 %v2669_v63  ;;  %v609_v63 = vld [vmem:[%s3176_s4 + $0xcb0] sm:$0xff] }
 0x2bc   : > { %v2499_v5 = vpack.c.bf16 %v609_v63, %v603_v15  ;;  %v676_v15 = vld [vmem:[%s3176_s4 + $0xec8] sm:$0xff]  ;;  %v682_v63 = vld [vmem:[%s3176_s4 + $0xef8] sm:$0xff] }
 0x2c1   : > { %2480 = vmatpush1.bf16.xpose.msra.mxu0 %v2479_v7  ;;  %v2501_v7 = vpack.c.bf16 %v622_v3, %v616_v2 }
 0x2c2   : > { %2672 = vmatpush1.bf16.xpose.msra.mxu1 %v2671_v8  ;;  %2482 = vmatprep.subr.bf16.mxu0 %v2481_v9  ;;  %v2693_v8 = vpack.c.bf16 %v814_v25, %v808_v4  ;;  %v615_v9 = vld [vmem:[%s3176_s4 + $0xce0] sm:$0xff]  ;;  %v2521_v4 = vpack.c.bf16 %v682_v63, %v676_v15  ;;  %v2713_v25 = vpack.c.bf16 %v874_v1, %v868_v0 }
 0x2c3   : > { %2674 = vmatprep.subr.bf16.mxu1 %v2673_v10  ;;  %v621_v10 = vld [vmem:[%s3176_s4 + $0xd10] sm:$0xff] }
 0x2c4   : > { %v2503_v18 = vpack.c.bf16 %v621_v10, %v615_v9  ;;  %v688_v9 = vld [vmem:[%s3176_s4 + $0xf28] sm:$0xff]  ;;  %v694_v10 = vld [vmem:[%s3176_s4 + $0xf58] sm:$0xff] }
 0x2c9   : > { %2484 = vmatpush1.bf16.xpose.msra.mxu0 %v2483_v22  ;;  %v2697_v22 = vpack.c.bf16 %v826_v17, %v820_v16  ;;  %v2525_v16 = vpack.c.bf16 %v694_v10, %v688_v9  ;;  %v2717_v17 = vpack.c.bf16 %v886_v12, %v880_v11 }
 0x2ca   : > { %2676 = vmatpush1.bf16.xpose.msra.mxu1 %v2675_v23  ;;  %2486 = vmatprep.subr.bf16.mxu0 %v2485_v24  ;;  %v627_v23 = vld [vmem:[%s3176_s4 + $0xd40] sm:$0xff]  ;;  %v633_v24 = vld [vmem:[%s3176_s4 + $0xd70] sm:$0xff] }
 0x2cb   : > { %2678 = vmatprep.subr.bf16.mxu1 %v2677_v26  ;;  %v819_v26 = vld [vmem:[%s3176_s4 + $0x1340] sm:$0xff]  ;;  %v2507_v33 = vpack.c.bf16 %v633_v24, %v627_v23  ;;  %v700_v23 = vld [vmem:[%s3176_s4 + $0xf88] sm:$0xff]  ;;  %v706_v24 = vld [vmem:[%s3176_s4 + $0xfb8] sm:$0xff] }
 0x2cc   : > { %v2699_v14 = vpack.c.bf16 %v825_v27, %v819_v26  ;;  %v892_v26 = vld [vmem:[%s3176_s4 + $0x1588] sm:$0xff]  ;;  %v898_v27 = vld [vmem:[%s3176_s4 + $0x15b8] sm:$0xff] }
 0x2d1   : > { %2488 = vmatpush1.bf16.xpose.msra.mxu0 %v2487_v36  ;;  %v2701_v36 = vpack.c.bf16 %v838_v32, %v832_v30  ;;  %v2529_v30 = vpack.c.bf16 %v706_v24, %v700_v23  ;;  %v2721_v32 = vpack.c.bf16 %v898_v27, %v892_v26 }
 0x2d2   : > { %2680 = vmatpush1.bf16.xpose.msra.mxu1 %v2679_v37  ;;  %2490 = vmatprep.subr.bf16.mxu0 %v2489_v38  ;;  %v639_v37 = vld [vmem:[%s3176_s4 + $0xda0] sm:$0xff]  ;;  %v645_v38 = vld [vmem:[%s3176_s4 + $0xdd0] sm:$0xff] }
 0x2d3   : > { %2682 = vmatprep.subr.bf16.mxu1 %v2681_v39  ;;  %v831_v39 = vld [vmem:[%s3176_s4 + $0x13a0] sm:$0xff]  ;;  %v2511_v44 = vpack.c.bf16 %v645_v38, %v639_v37  ;;  %v712_v37 = vld [vmem:[%s3176_s4 + $0xfe8] sm:$0xff]  ;;  %v718_v38 = vld [vmem:[%s3176_s4 + $0x1018] sm:$0xff] }
 0x2d4   : > { %v2703_v45 = vpack.c.bf16 %v837_v40, %v831_v39  ;;  %v904_v39 = vld [vmem:[%s3176_s4 + $0x15e8] sm:$0xff]  ;;  %v910_v40 = vld [vmem:[%s3176_s4 + $0x1618] sm:$0xff] }
 0x2d9   : > { %2492 = vmatpush1.bf16.xpose.msra.mxu0 %v2491_v47  ;;  %v2705_v47 = vpack.c.bf16 %v850_v20, %v844_v43  ;;  %v2533_v43 = vpack.c.bf16 %v718_v38, %v712_v37  ;;  %v2725_v20 = vpack.c.bf16 %v910_v40, %v904_v39 }
 0x2da   : > { %2684 = vmatpush1.bf16.xpose.msra.mxu1 %v2683_v48  ;;  %2494 = vmatprep.subr.bf16.mxu0 %v2493_v49  ;;  %v651_v48 = vld [vmem:[%s3176_s4 + $0xe00] sm:$0xff]  ;;  %v657_v49 = vld [vmem:[%s3176_s4 + $0xe30] sm:$0xff] }
 0x2db   : > { %2686 = vmatprep.subr.bf16.mxu1 %v2685_v50  ;;  %v843_v50 = vld [vmem:[%s3176_s4 + $0x1400] sm:$0xff]  ;;  %v2515_v55 = vpack.c.bf16 %v657_v49, %v651_v48  ;;  %v724_v48 = vld [vmem:[%s3176_s4 + $0x1048] sm:$0xff]  ;;  %v730_v49 = vld [vmem:[%s3176_s4 + $0x1078] sm:$0xff] }
 0x2dc   : > { %v2707_v56 = vpack.c.bf16 %v849_v51, %v843_v50  ;;  %v916_v50 = vld [vmem:[%s3176_s4 + $0x1648] sm:$0xff]  ;;  %v922_v51 = vld [vmem:[%s3176_s4 + $0x1678] sm:$0xff] }
 0x2e0   : > { %1542 = vmatmul.mubr.f32.vlgmr.msra.gmra.mrb[2].mxu0 %v2847_v62 }
 0x2e1   : > { %2496 = vmatpush1.bf16.xpose.msra.mxu0 %v2495_v58  ;;  %1755 = vmatmul.mubr.f32.vlgmr.msra.gmra.mrb[2].mxu1 %v2847_v62  ;;  %v2709_v58 = vpack.c.bf16 %v862_v54, %v856_v31  ;;  %v861_v62 = vld [vmem:[%s3176_s4 + $0x1490] sm:$0xff]  ;;  %v2537_v31 = vpack.c.bf16 %v730_v49, %v724_v48  ;;  %v2729_v54 = vpack.c.bf16 %v922_v51, %v916_v50 }
 0x2e2   : > { %2688 = vmatpush1.bf16.xpose.msra.mxu1 %v2687_v59  ;;  %2498 = vmatprep.subr.bf16.mxu0 %v2497_v60  ;;  %v663_v59 = vld [vmem:[%s3176_s4 + $0xe60] sm:$0xff]  ;;  %v669_v60 = vld [vmem:[%s3176_s4 + $0xe90] sm:$0xff] }
 0x2e3   : > { %2690 = vmatprep.subr.bf16.mxu1 %v2689_v61  ;;  %1612 = vmatprep.mubr.f32.mxu0 %v3472_v35  ;;  %v855_v61 = vld [vmem:[%s3176_s4 + $0x1460] sm:$0xff]  ;;  %v2519_v2 = vpack.c.bf16 %v669_v60, %v663_v59  ;;  %v736_v59 = vld [vmem:[%s3176_s4 + $0x10a8] sm:$0xff]  ;;  %v742_v60 = vld [vmem:[%s3176_s4 + $0x10d8] sm:$0xff] }
 0x2e4   : > { %1825 = vmatprep.mubr.f32.mxu1 %v3472_v35  ;;  %v634_v35 = vld [vmem:[%s3176_s4 + $0xd78] sm:$0xff]  ;;  %v2711_v3 = vpack.c.bf16 %v861_v62, %v855_v61  ;;  %v928_v61 = vld [vmem:[%s3176_s4 + $0x16a8] sm:$0xff]  ;;  %v2541_v0 = vpack.c.bf16 %v742_v60, %v736_v59 }
 0x2e5   : > { %v2505_v21 = vpack.c.bf16 %v634_v35, %v628_v13  ;;  %v934_v62 = vld [vmem:[%s3176_s4 + $0x16d8] sm:$0xff] }
 0x2e6   : > { %v2733_v1 = vpack.c.bf16 %v934_v62, %v928_v61 }
 0x2e9   : > { %2500 = vmatpush1.bf16.xpose.msra.mxu0 %v2499_v5  ;;  %v675_v5 = vld [vmem:[%s3176_s4 + $0xec0] sm:$0xff] }
 0x2ea   : > { %2692 = vmatpush1.bf16.xpose.msra.mxu1 %v2691_v6  ;;  %2502 = vmatprep.subr.bf16.mxu0 %v2501_v7  ;;  %v681_v6 = vld [vmem:[%s3176_s4 + $0xef0] sm:$0xff]  ;;  %v867_v7 = vld [vmem:[%s3176_s4 + $0x14c0] sm:$0xff] }
 0x2eb   : > { %2694 = vmatprep.subr.bf16.mxu1 %v2693_v8  ;;  %v873_v8 = vld [vmem:[%s3176_s4 + $0x14f0] sm:$0xff]  ;;  %v2523_v13 = vpack.c.bf16 %v681_v6, %v675_v5  ;;  %v748_v5 = vld [vmem:[%s3176_s4 + $0x1108] sm:$0xff]  ;;  %v754_v6 = vld [vmem:[%s3176_s4 + $0x1138] sm:$0xff] }
 0x2ec   : > { %v2715_v35 = vpack.c.bf16 %v873_v8, %v867_v7  ;;  %v940_v7 = vld [vmem:[%s3176_s4 + $0x1708] sm:$0xff]  ;;  %v946_v8 = vld [vmem:[%s3176_s4 + $0x1738] sm:$0xff]  ;;  %v2545_v11 = vpack.c.bf16 %v754_v6, %v748_v5 }
 0x2ed   : > { %v2737_v12 = vpack.c.bf16 %v946_v8, %v940_v7 }
 0x2f1   : > { %2504 = vmatpush1.bf16.xpose.msra.mxu0 %v2503_v18  ;;  %v687_v18 = vld [vmem:[%s3176_s4 + $0xf20] sm:$0xff] }
 0x2f2   : > { %2696 = vmatpush1.bf16.xpose.msra.mxu1 %v2695_v19  ;;  %2506 = vmatprep.subr.bf16.mxu0 %v2505_v21  ;;  %v693_v19 = vld [vmem:[%s3176_s4 + $0xf50] sm:$0xff]  ;;  %v879_v21 = vld [vmem:[%s3176_s4 + $0x1520] sm:$0xff] }
 0x2f3   : > { %2698 = vmatprep.subr.bf16.mxu1 %v2697_v22  ;;  %v885_v22 = vld [vmem:[%s3176_s4 + $0x1550] sm:$0xff]  ;;  %v2527_v28 = vpack.c.bf16 %v693_v19, %v687_v18  ;;  %v760_v18 = vld [vmem:[%s3176_s4 + $0x1168] sm:$0xff]  ;;  %v766_v19 = vld [vmem:[%s3176_s4 + $0x1198] sm:$0xff] }
 0x2f4   : > { %v2719_v29 = vpack.c.bf16 %v885_v22, %v879_v21  ;;  %v952_v21 = vld [vmem:[%s3176_s4 + $0x1768] sm:$0xff]  ;;  %v958_v22 = vld [vmem:[%s3176_s4 + $0x1798] sm:$0xff]  ;;  %v2549_v26 = vpack.c.bf16 %v766_v19, %v760_v18 }
 0x2f5   : > { %v2741_v27 = vpack.c.bf16 %v958_v22, %v952_v21 }
 0x2f9   : > { %2508 = vmatpush1.bf16.xpose.msra.mxu0 %v2507_v33  ;;  %v699_v33 = vld [vmem:[%s3176_s4 + $0xf80] sm:$0xff] }
 0x2fa   : > { %2700 = vmatpush1.bf16.xpose.msra.mxu1 %v2699_v14  ;;  %2510 = vmatprep.subr.bf16.mxu0 %v2509_v34  ;;  %v705_v14 = vld [vmem:[%s3176_s4 + $0xfb0] sm:$0xff]  ;;  %v891_v34 = vld [vmem:[%s3176_s4 + $0x1580] sm:$0xff] }
 0x2fb   : > { %2702 = vmatprep.subr.bf16.mxu1 %v2701_v36  ;;  %v897_v36 = vld [vmem:[%s3176_s4 + $0x15b0] sm:$0xff]  ;;  %v2531_v41 = vpack.c.bf16 %v705_v14, %v699_v33  ;;  %v772_v33 = vld [vmem:[%s3176_s4 + $0x11c8] sm:$0xff]  ;;  %v778_v14 = vld [vmem:[%s3176_s4 + $0x11f8] sm:$0xff] }
 0x2fc   : > { %v2723_v42 = vpack.c.bf16 %v897_v36, %v891_v34  ;;  %v964_v34 = vld [vmem:[%s3176_s4 + $0x17c8] sm:$0xff]  ;;  %v970_v36 = vld [vmem:[%s3176_s4 + $0x17f8] sm:$0xff]  ;;  %v2553_v39 = vpack.c.bf16 %v778_v14, %v772_v33 }
 0x2fd   : > { %v2745_v40 = vpack.c.bf16 %v970_v36, %v964_v34 }
 0x301   : > { %2512 = vmatpush1.bf16.xpose.msra.mxu0 %v2511_v44  ;;  %v711_v44 = vld [vmem:[%s3176_s4 + $0xfe0] sm:$0xff] }
 0x302   : > { %2704 = vmatpush1.bf16.xpose.msra.mxu1 %v2703_v45  ;;  %2514 = vmatprep.subr.bf16.mxu0 %v2513_v46  ;;  %v717_v45 = vld [vmem:[%s3176_s4 + $0x1010] sm:$0xff]  ;;  %v903_v46 = vld [vmem:[%s3176_s4 + $0x15e0] sm:$0xff] }
 0x303   : > { %2706 = vmatprep.subr.bf16.mxu1 %v2705_v47  ;;  %v909_v47 = vld [vmem:[%s3176_s4 + $0x1610] sm:$0xff]  ;;  %v2535_v52 = vpack.c.bf16 %v717_v45, %v711_v44 }
 0x304   : > { %v2727_v53 = vpack.c.bf16 %v909_v47, %v903_v46  ;;  %v2848_v46 = vld [vmem:[#allocation2 + $0x10] sm:$0xff] }
 0x309   : > { %2516 = vmatpush1.bf16.xpose.msra.mxu0 %v2515_v55  ;;  %v723_v55 = vld [vmem:[%s3176_s4 + $0x1040] sm:$0xff] }
 0x30a   : > { %2708 = vmatpush1.bf16.xpose.msra.mxu1 %v2707_v56  ;;  %2518 = vmatprep.subr.bf16.mxu0 %v2517_v57  ;;  %v729_v56 = vld [vmem:[%s3176_s4 + $0x1070] sm:$0xff]  ;;  %v915_v57 = vld [vmem:[%s3176_s4 + $0x1640] sm:$0xff] }
 0x30b   : > { %2710 = vmatprep.subr.bf16.mxu1 %v2709_v58  ;;  %v921_v58 = vld [vmem:[%s3176_s4 + $0x1670] sm:$0xff]  ;;  %v2539_v15 = vpack.c.bf16 %v729_v56, %v723_v55 }
 0x30c   : > { %v2731_v63 = vpack.c.bf16 %v921_v58, %v915_v57 }
 0x311   : > { %2520 = vmatpush1.bf16.xpose.msra.mxu0 %v2519_v2  ;;  %v735_v2 = vld [vmem:[%s3176_s4 + $0x10a0] sm:$0xff] }
 0x312   : > { %2712 = vmatpush1.bf16.xpose.msra.mxu1 %v2711_v3  ;;  %2522 = vmatprep.subr.bf16.mxu0 %v2521_v4  ;;  %v741_v3 = vld [vmem:[%s3176_s4 + $0x10d0] sm:$0xff]  ;;  %v927_v4 = vld [vmem:[%s3176_s4 + $0x16a0] sm:$0xff] }
 0x313   : > { %2714 = vmatprep.subr.bf16.mxu1 %v2713_v25  ;;  %v933_v25 = vld [vmem:[%s3176_s4 + $0x16d0] sm:$0xff]  ;;  %v2543_v9 = vpack.c.bf16 %v741_v3, %v735_v2 }
 0x314   : > { %v2735_v10 = vpack.c.bf16 %v933_v25, %v927_v4 }
 0x319   : > { %2524 = vmatpush1.bf16.xpose.msra.mxu0 %v2523_v13  ;;  %v747_v13 = vld [vmem:[%s3176_s4 + $0x1100] sm:$0xff] }
 0x31a   : > { %2716 = vmatpush1.bf16.xpose.msra.mxu1 %v2715_v35  ;;  %2526 = vmatprep.subr.bf16.mxu0 %v2525_v16  ;;  %v753_v35 = vld [vmem:[%s3176_s4 + $0x1130] sm:$0xff]  ;;  %v939_v16 = vld [vmem:[%s3176_s4 + $0x1700] sm:$0xff] }
 0x31b   : > { %2718 = vmatprep.subr.bf16.mxu1 %v2717_v17  ;;  %v945_v17 = vld [vmem:[%s3176_s4 + $0x1730] sm:$0xff]  ;;  %v2547_v23 = vpack.c.bf16 %v753_v35, %v747_v13 }
 0x31c   : > { %v2739_v24 = vpack.c.bf16 %v945_v17, %v939_v16 }
 0x321   : > { %2528 = vmatpush1.bf16.xpose.msra.mxu0 %v2527_v28  ;;  %v759_v28 = vld [vmem:[%s3176_s4 + $0x1160] sm:$0xff] }
 0x322   : > { %2720 = vmatpush1.bf16.xpose.msra.mxu1 %v2719_v29  ;;  %2530 = vmatprep.subr.bf16.mxu0 %v2529_v30  ;;  %v765_v29 = vld [vmem:[%s3176_s4 + $0x1190] sm:$0xff]  ;;  %v951_v30 = vld [vmem:[%s3176_s4 + $0x1760] sm:$0xff] }
 0x323   : > { %2722 = vmatprep.subr.bf16.mxu1 %v2721_v32  ;;  %v957_v32 = vld [vmem:[%s3176_s4 + $0x1790] sm:$0xff]  ;;  %v2551_v37 = vpack.c.bf16 %v765_v29, %v759_v28 }
 0x324   : > { %v2743_v38 = vpack.c.bf16 %v957_v32, %v951_v30 }
 0x329   : > { %2532 = vmatpush1.bf16.xpose.msra.mxu0 %v2531_v41  ;;  %v771_v41 = vld [vmem:[%s3176_s4 + $0x11c0] sm:$0xff] }
 0x32a   : > { %2724 = vmatpush1.bf16.xpose.msra.mxu1 %v2723_v42  ;;  %2534 = vmatprep.subr.bf16.mxu0 %v2533_v43  ;;  %v777_v42 = vld [vmem:[%s3176_s4 + $0x11f0] sm:$0xff]  ;;  %v963_v43 = vld [vmem:[%s3176_s4 + $0x17c0] sm:$0xff] }
 0x32b   : > { %2726 = vmatprep.subr.bf16.mxu1 %v2725_v20  ;;  %v969_v20 = vld [vmem:[%s3176_s4 + $0x17f0] sm:$0xff]  ;;  %v2555_v44 = vpack.c.bf16 %v777_v42, %v771_v41 }
 0x32c   : > { %v2747_v45 = vpack.c.bf16 %v969_v20, %v963_v43 }
 0x331   : > { %2536 = vmatpush1.bf16.xpose.msra.mxu0 %v2535_v52 }
 0x332   : > { %2728 = vmatpush1.bf16.xpose.msra.mxu1 %v2727_v53  ;;  %2538 = vmatprep.subr.bf16.mxu0 %v2537_v31 }
 0x333   : > { %2730 = vmatprep.subr.bf16.mxu1 %v2729_v54 }
 0x339   : > { %2540 = vmatpush1.bf16.xpose.msra.mxu0 %v2539_v15 }
 0x33a   : > { %2732 = vmatpush1.bf16.xpose.msra.mxu1 %v2731_v63  ;;  %2542 = vmatprep.subr.bf16.mxu0 %v2541_v0 }
 0x33b   : > { %2734 = vmatprep.subr.bf16.mxu1 %v2733_v1 }
 0x341   : > { %2544 = vmatpush1.bf16.xpose.msra.mxu0 %v2543_v9 }
 0x342   : > { %2736 = vmatpush1.bf16.xpose.msra.mxu1 %v2735_v10  ;;  %2546 = vmatprep.subr.bf16.mxu0 %v2545_v11 }
 0x343   : > { %2738 = vmatprep.subr.bf16.mxu1 %v2737_v12 }
 0x349   : > { %2548 = vmatpush1.bf16.xpose.msra.mxu0 %v2547_v23 }
 0x34a   : > { %2740 = vmatpush1.bf16.xpose.msra.mxu1 %v2739_v24  ;;  %2550 = vmatprep.subr.bf16.mxu0 %v2549_v26 }
 0x34b   : > { %2742 = vmatprep.subr.bf16.mxu1 %v2741_v27 }
 0x351   : > { %2552 = vmatpush1.bf16.xpose.msra.mxu0 %v2551_v37 }
 0x352   : > { %2744 = vmatpush1.bf16.xpose.msra.mxu1 %v2743_v38  ;;  %2554 = vmatprep.subr.bf16.mxu0 %v2553_v39 }
 0x353   : > { %2746 = vmatprep.subr.bf16.mxu1 %v2745_v40 }
 0x359   : > { %2556 = vmatpush1.bf16.xpose.msra.mxu0 %v2555_v44 }
 0x35a   : > { %2748 = vmatpush1.bf16.xpose.msra.mxu1 %v2747_v45 }
 0x360   : > { %1613 = vmatmul.mubr.f32.vlgmr.msra.gmra.mrb[2].mxu0 %v2848_v46 }
 0x361   : > { %1826 = vmatmul.mubr.f32.vlgmr.msra.gmra.mrb[2].mxu1 %v2848_v46 }
 0x433   : > { %v1614_v47 = vpop.f32.mrb[2].mxu0 }
 0x434   : > { %v1827_v48 = vpop.f32.mrb[2].mxu1  ;;  %v1616_v49 = vpop.f32.mrb[3].mxu0 }
 0x435   : > { %v1842_v50 = vcombine.low %v1614_v47, %v1616_v49  ;;  %v1829_v51 = vpop.f32.mrb[3].mxu1 }
 0x436   : > { %v1843_v52 = vcombine.low %v1827_v48, %v1829_v51 }
 0x437   : > { %1850 = vst [vmem:[%s3829_s20 + $0x10] sm:$0xff] %v1842_v50 }
 0x438   : > { %1851 = vst [vmem:[%s3829_s20 + $0x18] sm:$0xff] %v1843_v52 }
 0x439   : > { %2920 = shalt.err (!%p2917_p7)
}
 0x43a   : > { %s2921_s6 = scalar_lea.hbm %s3996_s29, 512  ;;  %s2925_s19 = scalar_lea.hbm %s4048_s2, 2048 }
 0x43b   : > { %p2922_p1 = scmp.ne.s32.totalorder %s3996_s29, %s2921_s6  ;;  %p2926_p12 = scmp.lt.u32.totalorder %s3996_s29, %s4048_s2 }
 0x43c   : > { %p2927_p2 = scmp.lt.u32.totalorder %s2925_s19, %s2921_s6  ;;  %p2929_p6 = scmp.lt.u32.totalorder %s2921_s6, %s3996_s29 }
 0x43d   : > { %p2923_p4 = pnand %p2922_p1, %p4069_p10 }
 0x43e   : > { %p2928_p8 = por %p2927_p2, %p2926_p12 }
 0x43f   : > { %p2924_p5 = pneg %p2923_p4 }
 0x440   : > { %p2930_p11 = por %p2929_p6, %p2928_p8 }
 0x442   : > { %p2931_p13 = pnand %p2930_p11, %p2924_p5 }
 0x444   : > { %2934 = shalt.err (!%p2931_p13)
}
 0x445   : > { %2774 = dma.vmem_to_hbm [thread:$0]  (%p4069_p10), %s3998_s26, 512, %s3996_s29, %s1853_s5  }
 0x446 PF: > { %p2791_p0 = scmp.ge.s32.totalorder %s2993_s14, 2  ;;  %s1881_s4 = sand.u32 1, %s2973_s9  }
 0x447   : > { %p4070_p9 = scmp.ne.s32.totalorder %s4059_s22, 0  ;;  %s1882_s18 = scalar_lea.sflag [#allocation4], %s1881_s4 }
 0x449   : > { %p2785_p3 = pnand %p2791_p0, %p4070_p9 }
 0x44b   : > { %2968 = dma.done.wait (!%p2785_p3), %s1882_s18, 512  }
 0x44c   : > { %2970 = vsyncadd (!%p2785_p3), %s1882_s18, 4294966784  ;;  %s19_s14 = sadd.s32 1, %s2993_s14   ;;  %s4071_s9 = smov %s2977_s10 }
 0x44d   : > { %p16_p7 = scmp.ge.s32.totalorder %s19_s14, 6   ;;  %s4072_s10 = smov %s2981_s11 }
 0x44e   : > { %s4073_s11 = smov %s3133_s25  ;;  %s4074_s12 = smov %s2989_s13 }
 0x44f   : > { %s4075_s13 = smov %s4077_s28  ;;  %18 = sbr.rel (!%p16_p7) target bundleno = 7 (0x7), region = 79 }
 0x456   :  { %1887 = vsyncpa [#allocation3], 1 }
 0x457   :  { %1889 = vsyncpa [#allocation3 + $0x1], 1 }
 0x458   :  { %1890 = vsyncpa [#allocation6], 1 }
 0x459   :  { %1892 = vsyncpa [#allocation6 + $0x1], 1 }
 0x45a   :  { %1893 = vsyncpa [#allocation4], 1 }
 0x45b   :  { %1895 = vsyncpa [#allocation4 + $0x1], 1 }

</bundles_post_ra>
